<compile_context>
chip_gen: v7x
topology: tpu7x:2x2x1
jax: 0.10.0
libtpu: 0.0.40
codegen_flags: <defaults>
</compile_context>

<pallas_src>
import jax
import jax.numpy as jnp
from jax import lax
from jax.experimental import pallas as pl
from jax.experimental.pallas import tpu as pltpu


def _actor_critic_kernel(x_ref, w1_ref, b1_ref, w2_ref, b2_ref,
                         wfc_ref, bfc_ref, hw_ref, hb_ref,
                         alim_ref, wca_ref,
                         out_ref, flat_ref):
    f32 = jnp.float32
    cdt = x_ref.dtype

    M1, K1 = x_ref.shape[1], x_ref.shape[2]          # M1 = KH2 * H2 * Bt
    KH2, _, C2 = w2_ref.shape
    Bt, Ap1 = out_ref.shape
    A = Ap1 - 1
    MB = M1 // KH2                                    # H2 * Bt
    H2 = MB // Bt

    # ---- Conv2d(C, 32, (4,3), stride=(2,1)) + ReLU --------------------------
    # one matmul covering all three conv2 row phases; rows ordered (kh2, oh, b)
    x = x_ref[0]                                                  # (M1, K1)
    h1 = jnp.dot(x, w1_ref[...], preferred_element_type=f32) + b1_ref[...]
    h1 = jnp.maximum(h1, 0.0).astype(cdt)                         # (M1, 32)

    # ---- Conv2d(32, 64, (3,1), stride=(2,1)) + ReLU -------------------------
    acc = jnp.dot(h1[0:MB], w2_ref[0], preferred_element_type=f32)
    for kh in range(1, KH2):
        acc = acc + jnp.dot(h1[kh * MB:(kh + 1) * MB], w2_ref[kh],
                            preferred_element_type=f32)
    h2 = jnp.maximum(acc + b2_ref[...], 0.0)                      # (H2*Bt, 64)

    # ---- Flatten: h2 rows are (oh, b); pack into (Bt, H2*C2) lane-major -----
    for oh in range(H2):
        flat_ref[:, oh * C2:(oh + 1) * C2] = h2[oh * Bt:(oh + 1) * Bt, :]

    # ---- Linear(64*H2, hidden) + ReLU: single K=1536 contraction ------------
    feats = jnp.dot(flat_ref[...].astype(cdt), wfc_ref[...],
                    preferred_element_type=f32) + bfc_ref[...]
    feats = jnp.maximum(feats, 0.0)                               # (Bt, hidden)

    # ---- fused actor / critic heads -----------------------------------------
    z = jnp.dot(feats.astype(cdt), hw_ref[...],
                preferred_element_type=f32) + hb_ref[...]         # (Bt, A+1)
    action = jnp.tanh(z[:, 0:A]) * alim_ref[...]                  # (Bt, A)
    value = z[:, A:Ap1] + jnp.sum(action * wca_ref[...],
                                  axis=1, keepdims=True)          # (Bt, 1)

    out_ref[:, 0:A] = action
    out_ref[:, A:Ap1] = value


def actor_critic_forward(obs, params, action_lim, *, batch_block=64,
                         compute_dtype=jnp.bfloat16):
    """obs: (B, C, 100, 3) float32 (NCHW, as in PyTorch). Returns (action, value)."""
    B, C, H_in, W_in = obs.shape
    KH1, KW1, S1 = 4, 3, 2
    KH2, S2 = 3, 2
    assert W_in == KW1, "module requires input width 3"
    H1 = (H_in - KH1) // S1 + 1
    H2 = (H1 - KH2) // S2 + 1
    C1 = params["w1"].shape[0]                 # 32
    C2 = params["w2"].shape[0]                 # 64
    hidden = params["wfc"].shape[0]
    A = params["wa"].shape[0]
    assert params["wfc"].shape[1] == C2 * H2 * 1

    f32 = jnp.float32
    cdt = compute_dtype
    K1 = C * KH1 * KW1

    # ---- batch blocking: Bt multiple of 8; aim for >=2 grid steps (v7x 2 TCs)
    bb = max(8, batch_block - batch_block % 8)
    half = -(-B // 2)
    half = half + (-half) % 8
    Bt = max(8, min(bb, half))
    B_pad = B + (-B) % Bt
    n_blk = B_pad // Bt
    if B_pad != B:
        obs = jnp.pad(obs, ((0, B_pad - B), (0, 0), (0, 0), (0, 0)))

    # ---- plain-JAX glue: im2col at the 3*H2 conv1 rows that conv2 consumes --
    rows = (S1 * (S2 * jnp.arange(H2)[None, :, None]
                  + jnp.arange(KH2)[:, None, None])
            + jnp.arange(KH1)[None, None, :])                # (KH2, H2, KH1)
    xg = obs[:, :, rows, :]                                  # (B,C,KH2,H2,KH1,W)
    x_col = (xg.transpose(2, 3, 0, 1, 4, 5)                  # (KH2,H2,B,C,KH1,W)
             .reshape(KH2, H2, n_blk, Bt, K1)
             .transpose(2, 0, 1, 3, 4)                       # (nblk,KH2,H2,Bt,K1)
             .reshape(n_blk, KH2 * H2 * Bt, K1)
             .astype(cdt))

    # ---- parameter re-layout -------------------------------------------------
    w1_k = params["w1"].reshape(C1, K1).T.astype(cdt)                  # (K1, 32)
    b1_k = params["b1"].reshape(1, C1).astype(f32)
    w2_k = params["w2"][:, :, :, 0].transpose(2, 1, 0).astype(cdt)     # (3,32,64)
    b2_k = params["b2"].reshape(1, C2).astype(f32)
    # PyTorch Flatten is channel-major (flat = c*H2 + oh); kernel uses oh*C2 + c
    wfc_k = (params["wfc"].reshape(hidden, C2, H2)
             .transpose(2, 1, 0).reshape(H2 * C2, hidden).astype(cdt))
    bfc_k = params["bfc"].reshape(1, hidden).astype(f32)
    hw_k = jnp.concatenate([params["wa"].T, params["wc"][:, :hidden].T],
                           axis=1).astype(cdt)                         # (hid,A+1)
    hb_k = jnp.concatenate([params["ba"], params["bc"]]
                           ).reshape(1, A + 1).astype(f32)
    alim_k = jnp.asarray(action_lim, f32).reshape(1, A)
    wca_k = params["wc"][:, hidden:].reshape(1, A).astype(f32)

    def const_spec(a):
        nd = a.ndim
        return pl.BlockSpec(a.shape, lambda b, _nd=nd: (0,) * _nd)

    consts = [w1_k, b1_k, w2_k, b2_k, wfc_k, bfc_k, hw_k, hb_k, alim_k, wca_k]
    in_specs = ([pl.BlockSpec((1, KH2 * H2 * Bt, K1), lambda b: (b, 0, 0))]
                + [const_spec(a) for a in consts])

    out = pl.pallas_call(
        _actor_critic_kernel,
        out_shape=jax.ShapeDtypeStruct((B_pad, A + 1), f32),
        grid_spec=pltpu.PrefetchScalarGridSpec(
            num_scalar_prefetch=0,
            grid=(n_blk,),
            in_specs=in_specs,
            out_specs=pl.BlockSpec((Bt, A + 1), lambda b: (b, 0)),
            scratch_shapes=[pltpu.VMEM((Bt, H2 * C2), jnp.float32)],
        ),
        compiler_params=pltpu.CompilerParams(
            dimension_semantics=("parallel",)),
    )(x_col, *consts)

    # TODO(synk): target_actions branch of the PyTorch forward (critic fed
    # external actions instead of the policy action) is not implemented.
    return out[:B, :A], out[:B, A:A + 1]


def reference_forward(obs, params, action_lim):
    """Pure-JAX reference replicating the PyTorch forward exactly (f32)."""
    dn = ("NCHW", "OIHW", "NCHW")
    y = lax.conv_general_dilated(obs, params["w1"], (2, 1), "VALID",
                                 dimension_numbers=dn)
    y = jnp.maximum(y + params["b1"][None, :, None, None], 0.0)
    y = lax.conv_general_dilated(y, params["w2"], (2, 1), "VALID",
                                 dimension_numbers=dn)
    y = jnp.maximum(y + params["b2"][None, :, None, None], 0.0)
    feats = y.reshape(y.shape[0], -1) @ params["wfc"].T + params["bfc"]
    feats = jnp.maximum(feats, 0.0)
    action = jnp.tanh(feats @ params["wa"].T + params["ba"]) * action_lim[None, :]
    value = jnp.concatenate([feats, action], axis=1) @ params["wc"].T + params["bc"]
    return action, value


if __name__ == "__main__":
    key = jax.random.PRNGKey(0)
    B, C = 2, 4
    H_in, W_in = 100, 3          # Linear(64*24*1, hidden) pins H_in=100, W=3
    hidden = 64                  # module default hidden_size
    A = 6

    keys = jax.random.split(key, 11)

    def uni(k, shape, fan_in):
        bound = float(fan_in) ** -0.5
        return jax.random.uniform(k, shape, jnp.float32, -bound, bound)

    params = dict(
        w1=uni(keys[0], (32, C, 4, 3), C * 4 * 3),
        b1=uni(keys[1], (32,), C * 4 * 3),
        w2=uni(keys[2], (64, 32, 3, 1), 32 * 3 * 1),
        b2=uni(keys[3], (64,), 32 * 3 * 1),
        wfc=uni(keys[4], (hidden, 64 * 24 * 1), 64 * 24),
        bfc=uni(keys[5], (hidden,), 64 * 24),
        wa=uni(keys[6], (A, hidden), hidden),
        ba=uni(keys[7], (A,), hidden),
        wc=uni(keys[8], (1, hidden + A), hidden + A),
        bc=uni(keys[9], (1,), hidden + A),
    )
    action_lim = jnp.array([1.0, 2.0, 0.5, 1.5, 1.0, 2.0], dtype=jnp.float32)
    obs = jax.random.normal(keys[10], (B, C, H_in, W_in), jnp.float32)

    ref_action, ref_value = reference_forward(obs, params, action_lim)

    # exact-math path (f32 MXU operands)
    a32, v32 = actor_critic_forward(obs, params, action_lim,
                                    compute_dtype=jnp.float32)
    a32, v32 = jax.block_until_ready((a32, v32))
    assert a32.shape == (B, A) and v32.shape == (B, 1)
    assert jnp.allclose(a32, ref_action, atol=2e-3, rtol=2e-3)
    assert jnp.allclose(v32, ref_value, atol=2e-3, rtol=2e-3)

    # fast path (bf16 MXU operands, f32 accumulate)
    abf, vbf = actor_critic_forward(obs, params, action_lim)
    abf, vbf = jax.block_until_ready((abf, vbf))
    assert abf.shape == (B, A) and vbf.shape == (B, 1)
    assert jnp.allclose(abf, ref_action, atol=1e-2, rtol=1e-2)
    assert jnp.allclose(vbf, ref_value, atol=1e-2, rtol=1e-2)

    print("KERNEL_OK")
</pallas_src>

<mosaic_0001>
module attributes {stable_mosaic.version = 11 : i64} {
  func.func @_actor_critic_kernel(%arg0: i32, %arg1: memref<1x576x48xf32, #tpu.memory_space<vmem>>, %arg2: memref<48x32xf32, #tpu.memory_space<vmem>>, %arg3: memref<1x32xf32, #tpu.memory_space<vmem>>, %arg4: memref<3x32x64xf32, #tpu.memory_space<vmem>>, %arg5: memref<1x64xf32, #tpu.memory_space<vmem>>, %arg6: memref<1536x64xf32, #tpu.memory_space<vmem>>, %arg7: memref<1x64xf32, #tpu.memory_space<vmem>>, %arg8: memref<64x7xf32, #tpu.memory_space<vmem>>, %arg9: memref<1x7xf32, #tpu.memory_space<vmem>>, %arg10: memref<1x6xf32, #tpu.memory_space<vmem>>, %arg11: memref<1x6xf32, #tpu.memory_space<vmem>>, %arg12: memref<8x7xf32, #tpu.memory_space<vmem>>, %arg13: memref<8x1536xf32, #tpu.memory_space<vmem>>) attributes {dimension_semantics = [#tpu.dimension_semantics<parallel>], iteration_bounds = array<i64: 1>, scalar_prefetch = 0 : i64, scratch_operands = 1 : i64, tpu.core_type = #tpu.core_type<tc>, window_params = [{transform_indices = @transform_0, window_bounds = array<i64: 1, 576, 48>}, {pipeline_mode = #tpu.pipeline_mode<synchronous>, transform_indices = @transform_1, window_bounds = array<i64: 48, 32>}, {pipeline_mode = #tpu.pipeline_mode<synchronous>, transform_indices = @transform_2, window_bounds = array<i64: 1, 32>}, {pipeline_mode = #tpu.pipeline_mode<synchronous>, transform_indices = @transform_3, window_bounds = array<i64: 3, 32, 64>}, {pipeline_mode = #tpu.pipeline_mode<synchronous>, transform_indices = @transform_4, window_bounds = array<i64: 1, 64>}, {pipeline_mode = #tpu.pipeline_mode<synchronous>, transform_indices = @transform_5, window_bounds = array<i64: 1536, 64>}, {pipeline_mode = #tpu.pipeline_mode<synchronous>, transform_indices = @transform_6, window_bounds = array<i64: 1, 64>}, {pipeline_mode = #tpu.pipeline_mode<synchronous>, transform_indices = @transform_7, window_bounds = array<i64: 64, 7>}, {pipeline_mode = #tpu.pipeline_mode<synchronous>, transform_indices = @transform_8, window_bounds = array<i64: 1, 7>}, {pipeline_mode = #tpu.pipeline_mode<synchronous>, transform_indices = @transform_9, window_bounds = array<i64: 1, 6>}, {pipeline_mode = #tpu.pipeline_mode<synchronous>, transform_indices = @transform_10, window_bounds = array<i64: 1, 6>}, {transform_indices = @transform_11, window_bounds = array<i64: 8, 7>}]} {
    %c0 = arith.constant 0 : index
    %c0_0 = arith.constant 0 : index
    %c0_1 = arith.constant 0 : index
    %0 = vector.load %arg1[%c0, %c0_0, %c0_1] : memref<1x576x48xf32, #tpu.memory_space<vmem>>, vector<1x576x48xf32>
    %1 = vector.shape_cast %0 : vector<1x576x48xf32> to vector<576x48xf32>
    %c0_2 = arith.constant 0 : index
    %c0_3 = arith.constant 0 : index
    %2 = vector.load %arg2[%c0_2, %c0_3] : memref<48x32xf32, #tpu.memory_space<vmem>>, vector<48x32xf32>
    %cst = arith.constant dense<0.000000e+00> : vector<576x32xf32>
    %3 = tpu.matmul %1, %2, %cst {dimension_numbers = #tpu.dot_dimension_numbers<[1], [0], [0], [1], [0, 0, 1, 1], [], []>} : vector<576x48xf32>, vector<48x32xf32>, vector<576x32xf32> -> vector<576x32xf32>
    %c0_4 = arith.constant 0 : index
    %c0_5 = arith.constant 0 : index
    %4 = vector.load %arg3[%c0_4, %c0_5] : memref<1x32xf32, #tpu.memory_space<vmem>>, vector<1x32xf32>
    %5 = vector.broadcast %4 : vector<1x32xf32> to vector<576x32xf32>
    %6 = arith.addf %3, %5 : vector<576x32xf32>
    %cst_6 = arith.constant 0.000000e+00 : f32
    %7 = vector.broadcast %cst_6 : f32 to vector<576x32xf32>
    %8 = arith.maximumf %6, %7 : vector<576x32xf32>
    %9 = vector.extract_strided_slice %8 {offsets = [0, 0], sizes = [192, 32], strides = [1, 1]} : vector<576x32xf32> to vector<192x32xf32>
    %c0_7 = arith.constant 0 : index
    %c0_8 = arith.constant 0 : index
    %c0_9 = arith.constant 0 : index
    %10 = vector.load %arg4[%c0_7, %c0_8, %c0_9] : memref<3x32x64xf32, #tpu.memory_space<vmem>>, vector<1x32x64xf32>
    %11 = vector.shape_cast %10 : vector<1x32x64xf32> to vector<32x64xf32>
    %cst_10 = arith.constant dense<0.000000e+00> : vector<192x64xf32>
    %12 = tpu.matmul %9, %11, %cst_10 {dimension_numbers = #tpu.dot_dimension_numbers<[1], [0], [0], [1], [0, 0, 1, 1], [], []>} : vector<192x32xf32>, vector<32x64xf32>, vector<192x64xf32> -> vector<192x64xf32>
    %13 = vector.extract_strided_slice %8 {offsets = [192, 0], sizes = [192, 32], strides = [1, 1]} : vector<576x32xf32> to vector<192x32xf32>
    %c1 = arith.constant 1 : index
    %c0_11 = arith.constant 0 : index
    %c0_12 = arith.constant 0 : index
    %14 = vector.load %arg4[%c1, %c0_11, %c0_12] : memref<3x32x64xf32, #tpu.memory_space<vmem>>, vector<1x32x64xf32>
    %15 = vector.shape_cast %14 : vector<1x32x64xf32> to vector<32x64xf32>
    %cst_13 = arith.constant dense<0.000000e+00> : vector<192x64xf32>
    %16 = tpu.matmul %13, %15, %cst_13 {dimension_numbers = #tpu.dot_dimension_numbers<[1], [0], [0], [1], [0, 0, 1, 1], [], []>} : vector<192x32xf32>, vector<32x64xf32>, vector<192x64xf32> -> vector<192x64xf32>
    %17 = arith.addf %12, %16 : vector<192x64xf32>
    %18 = vector.extract_strided_slice %8 {offsets = [384, 0], sizes = [192, 32], strides = [1, 1]} : vector<576x32xf32> to vector<192x32xf32>
    %c2 = arith.constant 2 : index
    %c0_14 = arith.constant 0 : index
    %c0_15 = arith.constant 0 : index
    %19 = vector.load %arg4[%c2, %c0_14, %c0_15] : memref<3x32x64xf32, #tpu.memory_space<vmem>>, vector<1x32x64xf32>
    %20 = vector.shape_cast %19 : vector<1x32x64xf32> to vector<32x64xf32>
    %cst_16 = arith.constant dense<0.000000e+00> : vector<192x64xf32>
    %21 = tpu.matmul %18, %20, %cst_16 {dimension_numbers = #tpu.dot_dimension_numbers<[1], [0], [0], [1], [0, 0, 1, 1], [], []>} : vector<192x32xf32>, vector<32x64xf32>, vector<192x64xf32> -> vector<192x64xf32>
    %22 = arith.addf %17, %21 : vector<192x64xf32>
    %c0_17 = arith.constant 0 : index
    %c0_18 = arith.constant 0 : index
    %23 = vector.load %arg5[%c0_17, %c0_18] : memref<1x64xf32, #tpu.memory_space<vmem>>, vector<1x64xf32>
    %24 = vector.broadcast %23 : vector<1x64xf32> to vector<192x64xf32>
    %25 = arith.addf %22, %24 : vector<192x64xf32>
    %cst_19 = arith.constant 0.000000e+00 : f32
    %26 = vector.broadcast %cst_19 : f32 to vector<192x64xf32>
    %27 = arith.maximumf %25, %26 : vector<192x64xf32>
    %28 = vector.extract_strided_slice %27 {offsets = [0, 0], sizes = [8, 64], strides = [1, 1]} : vector<192x64xf32> to vector<8x64xf32>
    %c0_20 = arith.constant 0 : index
    %c0_21 = arith.constant 0 : index
    %29 = vector.load %arg13[%c0_20, %c0_21] : memref<8x1536xf32, #tpu.memory_space<vmem>>, vector<8x64xf32>
    tpu.vector_store %arg13[%c0_20, %c0_21], %28 {strides = array<i32>} : memref<8x1536xf32, #tpu.memory_space<vmem>>, vector<8x64xf32>,
    %30 = vector.extract_strided_slice %27 {offsets = [8, 0], sizes = [8, 64], strides = [1, 1]} : vector<192x64xf32> to vector<8x64xf32>
    %c0_22 = arith.constant 0 : index
    %c64 = arith.constant 64 : index
    %31 = vector.load %arg13[%c0_22, %c64] : memref<8x1536xf32, #tpu.memory_space<vmem>>, vector<8x64xf32>
    tpu.vector_store %arg13[%c0_22, %c64], %30 {strides = array<i32>} : memref<8x1536xf32, #tpu.memory_space<vmem>>, vector<8x64xf32>,
    %32 = vector.extract_strided_slice %27 {offsets = [16, 0], sizes = [8, 64], strides = [1, 1]} : vector<192x64xf32> to vector<8x64xf32>
    %c0_23 = arith.constant 0 : index
    %c128 = arith.constant 128 : index
    %33 = vector.load %arg13[%c0_23, %c128] : memref<8x1536xf32, #tpu.memory_space<vmem>>, vector<8x64xf32>
    tpu.vector_store %arg13[%c0_23, %c128], %32 {strides = array<i32>} : memref<8x1536xf32, #tpu.memory_space<vmem>>, vector<8x64xf32>,
    %34 = vector.extract_strided_slice %27 {offsets = [24, 0], sizes = [8, 64], strides = [1, 1]} : vector<192x64xf32> to vector<8x64xf32>
    %c0_24 = arith.constant 0 : index
    %c192 = arith.constant 192 : index
    %35 = vector.load %arg13[%c0_24, %c192] : memref<8x1536xf32, #tpu.memory_space<vmem>>, vector<8x64xf32>
    tpu.vector_store %arg13[%c0_24, %c192], %34 {strides = array<i32>} : memref<8x1536xf32, #tpu.memory_space<vmem>>, vector<8x64xf32>,
    %36 = vector.extract_strided_slice %27 {offsets = [32, 0], sizes = [8, 64], strides = [1, 1]} : vector<192x64xf32> to vector<8x64xf32>
    %c0_25 = arith.constant 0 : index
    %c256 = arith.constant 256 : index
    %37 = vector.load %arg13[%c0_25, %c256] : memref<8x1536xf32, #tpu.memory_space<vmem>>, vector<8x64xf32>
    tpu.vector_store %arg13[%c0_25, %c256], %36 {strides = array<i32>} : memref<8x1536xf32, #tpu.memory_space<vmem>>, vector<8x64xf32>,
    %38 = vector.extract_strided_slice %27 {offsets = [40, 0], sizes = [8, 64], strides = [1, 1]} : vector<192x64xf32> to vector<8x64xf32>
    %c0_26 = arith.constant 0 : index
    %c320 = arith.constant 320 : index
    %39 = vector.load %arg13[%c0_26, %c320] : memref<8x1536xf32, #tpu.memory_space<vmem>>, vector<8x64xf32>
    tpu.vector_store %arg13[%c0_26, %c320], %38 {strides = array<i32>} : memref<8x1536xf32, #tpu.memory_space<vmem>>, vector<8x64xf32>,
    %40 = vector.extract_strided_slice %27 {offsets = [48, 0], sizes = [8, 64], strides = [1, 1]} : vector<192x64xf32> to vector<8x64xf32>
    %c0_27 = arith.constant 0 : index
    %c384 = arith.constant 384 : index
    %41 = vector.load %arg13[%c0_27, %c384] : memref<8x1536xf32, #tpu.memory_space<vmem>>, vector<8x64xf32>
    tpu.vector_store %arg13[%c0_27, %c384], %40 {strides = array<i32>} : memref<8x1536xf32, #tpu.memory_space<vmem>>, vector<8x64xf32>,
    %42 = vector.extract_strided_slice %27 {offsets = [56, 0], sizes = [8, 64], strides = [1, 1]} : vector<192x64xf32> to vector<8x64xf32>
    %c0_28 = arith.constant 0 : index
    %c448 = arith.constant 448 : index
    %43 = vector.load %arg13[%c0_28, %c448] : memref<8x1536xf32, #tpu.memory_space<vmem>>, vector<8x64xf32>
    tpu.vector_store %arg13[%c0_28, %c448], %42 {strides = array<i32>} : memref<8x1536xf32, #tpu.memory_space<vmem>>, vector<8x64xf32>,
    %44 = vector.extract_strided_slice %27 {offsets = [64, 0], sizes = [8, 64], strides = [1, 1]} : vector<192x64xf32> to vector<8x64xf32>
    %c0_29 = arith.constant 0 : index
    %c512 = arith.constant 512 : index
    %45 = vector.load %arg13[%c0_29, %c512] : memref<8x1536xf32, #tpu.memory_space<vmem>>, vector<8x64xf32>
    tpu.vector_store %arg13[%c0_29, %c512], %44 {strides = array<i32>} : memref<8x1536xf32, #tpu.memory_space<vmem>>, vector<8x64xf32>,
    %46 = vector.extract_strided_slice %27 {offsets = [72, 0], sizes = [8, 64], strides = [1, 1]} : vector<192x64xf32> to vector<8x64xf32>
    %c0_30 = arith.constant 0 : index
    %c576 = arith.constant 576 : index
    %47 = vector.load %arg13[%c0_30, %c576] : memref<8x1536xf32, #tpu.memory_space<vmem>>, vector<8x64xf32>
    tpu.vector_store %arg13[%c0_30, %c576], %46 {strides = array<i32>} : memref<8x1536xf32, #tpu.memory_space<vmem>>, vector<8x64xf32>,
    %48 = vector.extract_strided_slice %27 {offsets = [80, 0], sizes = [8, 64], strides = [1, 1]} : vector<192x64xf32> to vector<8x64xf32>
    %c0_31 = arith.constant 0 : index
    %c640 = arith.constant 640 : index
    %49 = vector.load %arg13[%c0_31, %c640] : memref<8x1536xf32, #tpu.memory_space<vmem>>, vector<8x64xf32>
    tpu.vector_store %arg13[%c0_31, %c640], %48 {strides = array<i32>} : memref<8x1536xf32, #tpu.memory_space<vmem>>, vector<8x64xf32>,
    %50 = vector.extract_strided_slice %27 {offsets = [88, 0], sizes = [8, 64], strides = [1, 1]} : vector<192x64xf32> to vector<8x64xf32>
    %c0_32 = arith.constant 0 : index
    %c704 = arith.constant 704 : index
    %51 = vector.load %arg13[%c0_32, %c704] : memref<8x1536xf32, #tpu.memory_space<vmem>>, vector<8x64xf32>
    tpu.vector_store %arg13[%c0_32, %c704], %50 {strides = array<i32>} : memref<8x1536xf32, #tpu.memory_space<vmem>>, vector<8x64xf32>,
    %52 = vector.extract_strided_slice %27 {offsets = [96, 0], sizes = [8, 64], strides = [1, 1]} : vector<192x64xf32> to vector<8x64xf32>
    %c0_33 = arith.constant 0 : index
    %c768 = arith.constant 768 : index
    %53 = vector.load %arg13[%c0_33, %c768] : memref<8x1536xf32, #tpu.memory_space<vmem>>, vector<8x64xf32>
    tpu.vector_store %arg13[%c0_33, %c768], %52 {strides = array<i32>} : memref<8x1536xf32, #tpu.memory_space<vmem>>, vector<8x64xf32>,
    %54 = vector.extract_strided_slice %27 {offsets = [104, 0], sizes = [8, 64], strides = [1, 1]} : vector<192x64xf32> to vector<8x64xf32>
    %c0_34 = arith.constant 0 : index
    %c832 = arith.constant 832 : index
    %55 = vector.load %arg13[%c0_34, %c832] : memref<8x1536xf32, #tpu.memory_space<vmem>>, vector<8x64xf32>
    tpu.vector_store %arg13[%c0_34, %c832], %54 {strides = array<i32>} : memref<8x1536xf32, #tpu.memory_space<vmem>>, vector<8x64xf32>,
    %56 = vector.extract_strided_slice %27 {offsets = [112, 0], sizes = [8, 64], strides = [1, 1]} : vector<192x64xf32> to vector<8x64xf32>
    %c0_35 = arith.constant 0 : index
    %c896 = arith.constant 896 : index
    %57 = vector.load %arg13[%c0_35, %c896] : memref<8x1536xf32, #tpu.memory_space<vmem>>, vector<8x64xf32>
    tpu.vector_store %arg13[%c0_35, %c896], %56 {strides = array<i32>} : memref<8x1536xf32, #tpu.memory_space<vmem>>, vector<8x64xf32>,
    %58 = vector.extract_strided_slice %27 {offsets = [120, 0], sizes = [8, 64], strides = [1, 1]} : vector<192x64xf32> to vector<8x64xf32>
    %c0_36 = arith.constant 0 : index
    %c960 = arith.constant 960 : index
    %59 = vector.load %arg13[%c0_36, %c960] : memref<8x1536xf32, #tpu.memory_space<vmem>>, vector<8x64xf32>
    tpu.vector_store %arg13[%c0_36, %c960], %58 {strides = array<i32>} : memref<8x1536xf32, #tpu.memory_space<vmem>>, vector<8x64xf32>,
    %60 = vector.extract_strided_slice %27 {offsets = [128, 0], sizes = [8, 64], strides = [1, 1]} : vector<192x64xf32> to vector<8x64xf32>
    %c0_37 = arith.constant 0 : index
    %c1024 = arith.constant 1024 : index
    %61 = vector.load %arg13[%c0_37, %c1024] : memref<8x1536xf32, #tpu.memory_space<vmem>>, vector<8x64xf32>
    tpu.vector_store %arg13[%c0_37, %c1024], %60 {strides = array<i32>} : memref<8x1536xf32, #tpu.memory_space<vmem>>, vector<8x64xf32>,
    %62 = vector.extract_strided_slice %27 {offsets = [136, 0], sizes = [8, 64], strides = [1, 1]} : vector<192x64xf32> to vector<8x64xf32>
    %c0_38 = arith.constant 0 : index
    %c1088 = arith.constant 1088 : index
    %63 = vector.load %arg13[%c0_38, %c1088] : memref<8x1536xf32, #tpu.memory_space<vmem>>, vector<8x64xf32>
    tpu.vector_store %arg13[%c0_38, %c1088], %62 {strides = array<i32>} : memref<8x1536xf32, #tpu.memory_space<vmem>>, vector<8x64xf32>,
    %64 = vector.extract_strided_slice %27 {offsets = [144, 0], sizes = [8, 64], strides = [1, 1]} : vector<192x64xf32> to vector<8x64xf32>
    %c0_39 = arith.constant 0 : index
    %c1152 = arith.constant 1152 : index
    %65 = vector.load %arg13[%c0_39, %c1152] : memref<8x1536xf32, #tpu.memory_space<vmem>>, vector<8x64xf32>
    tpu.vector_store %arg13[%c0_39, %c1152], %64 {strides = array<i32>} : memref<8x1536xf32, #tpu.memory_space<vmem>>, vector<8x64xf32>,
    %66 = vector.extract_strided_slice %27 {offsets = [152, 0], sizes = [8, 64], strides = [1, 1]} : vector<192x64xf32> to vector<8x64xf32>
    %c0_40 = arith.constant 0 : index
    %c1216 = arith.constant 1216 : index
    %67 = vector.load %arg13[%c0_40, %c1216] : memref<8x1536xf32, #tpu.memory_space<vmem>>, vector<8x64xf32>
    tpu.vector_store %arg13[%c0_40, %c1216], %66 {strides = array<i32>} : memref<8x1536xf32, #tpu.memory_space<vmem>>, vector<8x64xf32>,
    %68 = vector.extract_strided_slice %27 {offsets = [160, 0], sizes = [8, 64], strides = [1, 1]} : vector<192x64xf32> to vector<8x64xf32>
    %c0_41 = arith.constant 0 : index
    %c1280 = arith.constant 1280 : index
    %69 = vector.load %arg13[%c0_41, %c1280] : memref<8x1536xf32, #tpu.memory_space<vmem>>, vector<8x64xf32>
    tpu.vector_store %arg13[%c0_41, %c1280], %68 {strides = array<i32>} : memref<8x1536xf32, #tpu.memory_space<vmem>>, vector<8x64xf32>,
    %70 = vector.extract_strided_slice %27 {offsets = [168, 0], sizes = [8, 64], strides = [1, 1]} : vector<192x64xf32> to vector<8x64xf32>
    %c0_42 = arith.constant 0 : index
    %c1344 = arith.constant 1344 : index
    %71 = vector.load %arg13[%c0_42, %c1344] : memref<8x1536xf32, #tpu.memory_space<vmem>>, vector<8x64xf32>
    tpu.vector_store %arg13[%c0_42, %c1344], %70 {strides = array<i32>} : memref<8x1536xf32, #tpu.memory_space<vmem>>, vector<8x64xf32>,
    %72 = vector.extract_strided_slice %27 {offsets = [176, 0], sizes = [8, 64], strides = [1, 1]} : vector<192x64xf32> to vector<8x64xf32>
    %c0_43 = arith.constant 0 : index
    %c1408 = arith.constant 1408 : index
    %73 = vector.load %arg13[%c0_43, %c1408] : memref<8x1536xf32, #tpu.memory_space<vmem>>, vector<8x64xf32>
    tpu.vector_store %arg13[%c0_43, %c1408], %72 {strides = array<i32>} : memref<8x1536xf32, #tpu.memory_space<vmem>>, vector<8x64xf32>,
    %74 = vector.extract_strided_slice %27 {offsets = [184, 0], sizes = [8, 64], strides = [1, 1]} : vector<192x64xf32> to vector<8x64xf32>
    %c0_44 = arith.constant 0 : index
    %c1472 = arith.constant 1472 : index
    %75 = vector.load %arg13[%c0_44, %c1472] : memref<8x1536xf32, #tpu.memory_space<vmem>>, vector<8x64xf32>
    tpu.vector_store %arg13[%c0_44, %c1472], %74 {strides = array<i32>} : memref<8x1536xf32, #tpu.memory_space<vmem>>, vector<8x64xf32>,
    %c0_45 = arith.constant 0 : index
    %c0_46 = arith.constant 0 : index
    %76 = vector.load %arg13[%c0_45, %c0_46] : memref<8x1536xf32, #tpu.memory_space<vmem>>, vector<8x1536xf32>
    %c0_47 = arith.constant 0 : index
    %c0_48 = arith.constant 0 : index
    %77 = vector.load %arg6[%c0_47, %c0_48] : memref<1536x64xf32, #tpu.memory_space<vmem>>, vector<1536x64xf32>
    %cst_49 = arith.constant dense<0.000000e+00> : vector<8x64xf32>
    %78 = tpu.matmul %76, %77, %cst_49 {dimension_numbers = #tpu.dot_dimension_numbers<[1], [0], [0], [1], [0, 0, 1, 1], [], []>} : vector<8x1536xf32>, vector<1536x64xf32>, vector<8x64xf32> -> vector<8x64xf32>
    %c0_50 = arith.constant 0 : index
    %c0_51 = arith.constant 0 : index
    %79 = vector.load %arg7[%c0_50, %c0_51] : memref<1x64xf32, #tpu.memory_space<vmem>>, vector<1x64xf32>
    %80 = vector.broadcast %79 : vector<1x64xf32> to vector<8x64xf32>
    %81 = arith.addf %78, %80 : vector<8x64xf32>
    %cst_52 = arith.constant 0.000000e+00 : f32
    %82 = vector.broadcast %cst_52 : f32 to vector<8x64xf32>
    %83 = arith.maximumf %81, %82 : vector<8x64xf32>
    %c0_53 = arith.constant 0 : index
    %c0_54 = arith.constant 0 : index
    %84 = vector.load %arg8[%c0_53, %c0_54] : memref<64x7xf32, #tpu.memory_space<vmem>>, vector<64x7xf32>
    %cst_55 = arith.constant dense<0.000000e+00> : vector<8x7xf32>
    %85 = tpu.matmul %83, %84, %cst_55 {dimension_numbers = #tpu.dot_dimension_numbers<[1], [0], [0], [1], [0, 0, 1, 1], [], []>} : vector<8x64xf32>, vector<64x7xf32>, vector<8x7xf32> -> vector<8x7xf32>
    %c0_56 = arith.constant 0 : index
    %c0_57 = arith.constant 0 : index
    %86 = vector.load %arg9[%c0_56, %c0_57] : memref<1x7xf32, #tpu.memory_space<vmem>>, vector<1x7xf32>
    %87 = vector.broadcast %86 : vector<1x7xf32> to vector<8x7xf32>
    %88 = arith.addf %85, %87 : vector<8x7xf32>
    %89 = vector.extract_strided_slice %88 {offsets = [0, 0], sizes = [8, 6], strides = [1, 1]} : vector<8x7xf32> to vector<8x6xf32>
    %90 = math.tanh %89 : vector<8x6xf32>
    %c0_58 = arith.constant 0 : index
    %c0_59 = arith.constant 0 : index
    %91 = vector.load %arg10[%c0_58, %c0_59] : memref<1x6xf32, #tpu.memory_space<vmem>>, vector<1x6xf32>
    %92 = vector.broadcast %91 : vector<1x6xf32> to vector<8x6xf32>
    %93 = arith.mulf %90, %92 : vector<8x6xf32>
    %94 = vector.extract_strided_slice %88 {offsets = [0, 6], sizes = [8, 1], strides = [1, 1]} : vector<8x7xf32> to vector<8x1xf32>
    %c0_60 = arith.constant 0 : index
    %c0_61 = arith.constant 0 : index
    %95 = vector.load %arg11[%c0_60, %c0_61] : memref<1x6xf32, #tpu.memory_space<vmem>>, vector<1x6xf32>
    %96 = vector.broadcast %95 : vector<1x6xf32> to vector<8x6xf32>
    %97 = arith.mulf %93, %96 : vector<8x6xf32>
    %cst_62 = arith.constant dense<0.000000e+00> : vector<8xf32>
    %98 = vector.multi_reduction <add>, %97, %cst_62 [1] : vector<8x6xf32> to vector<8xf32>
    %99 = vector.shape_cast %98 : vector<8xf32> to vector<8x1xf32>
    %100 = arith.addf %94, %99 : vector<8x1xf32>
    %c0_63 = arith.constant 0 : index
    %c0_64 = arith.constant 0 : index
    %101 = vector.load %arg12[%c0_63, %c0_64] : memref<8x7xf32, #tpu.memory_space<vmem>>, vector<8x6xf32>
    tpu.vector_store %arg12[%c0_63, %c0_64], %93 {strides = array<i32>} : memref<8x7xf32, #tpu.memory_space<vmem>>, vector<8x6xf32>,
    %c0_65 = arith.constant 0 : index
    %c6 = arith.constant 6 : index
    %102 = vector.load %arg12[%c0_65, %c6] : memref<8x7xf32, #tpu.memory_space<vmem>>, vector<8x1xf32>
    tpu.vector_store %arg12[%c0_65, %c6], %100 {strides = array<i32>} : memref<8x7xf32, #tpu.memory_space<vmem>>, vector<8x1xf32>,
    return
  }
  func.func @transform_0(%arg0: i32) -> (i32, i32, i32) {
    %c0_i32 = arith.constant 0 : i32
    %c0_i32_0 = arith.constant 0 : i32
    %c0_i32_1 = arith.constant 0 : i32
    return %arg0, %c0_i32, %c0_i32_0 : i32, i32, i32
  }
  func.func @transform_1(%arg0: i32) -> (i32, i32) {
    %c0_i32 = arith.constant 0 : i32
    %c0_i32_0 = arith.constant 0 : i32
    %c0_i32_1 = arith.constant 0 : i32
    return %c0_i32, %c0_i32_0 : i32, i32
  }
  func.func @transform_2(%arg0: i32) -> (i32, i32) {
    %c0_i32 = arith.constant 0 : i32
    %c0_i32_0 = arith.constant 0 : i32
    %c0_i32_1 = arith.constant 0 : i32
    return %c0_i32, %c0_i32_0 : i32, i32
  }
  func.func @transform_3(%arg0: i32) -> (i32, i32, i32) {
    %c0_i32 = arith.constant 0 : i32
    %c0_i32_0 = arith.constant 0 : i32
    %c0_i32_1 = arith.constant 0 : i32
    %c0_i32_2 = arith.constant 0 : i32
    return %c0_i32, %c0_i32_0, %c0_i32_1 : i32, i32, i32
  }
  func.func @transform_4(%arg0: i32) -> (i32, i32) {
    %c0_i32 = arith.constant 0 : i32
    %c0_i32_0 = arith.constant 0 : i32
    %c0_i32_1 = arith.constant 0 : i32
    return %c0_i32, %c0_i32_0 : i32, i32
  }
  func.func @transform_5(%arg0: i32) -> (i32, i32) {
    %c0_i32 = arith.constant 0 : i32
    %c0_i32_0 = arith.constant 0 : i32
    %c0_i32_1 = arith.constant 0 : i32
    return %c0_i32, %c0_i32_0 : i32, i32
  }
  func.func @transform_6(%arg0: i32) -> (i32, i32) {
    %c0_i32 = arith.constant 0 : i32
    %c0_i32_0 = arith.constant 0 : i32
    %c0_i32_1 = arith.constant 0 : i32
    return %c0_i32, %c0_i32_0 : i32, i32
  }
  func.func @transform_7(%arg0: i32) -> (i32, i32) {
    %c0_i32 = arith.constant 0 : i32
    %c0_i32_0 = arith.constant 0 : i32
    %c0_i32_1 = arith.constant 0 : i32
    return %c0_i32, %c0_i32_0 : i32, i32
  }
  func.func @transform_8(%arg0: i32) -> (i32, i32) {
    %c0_i32 = arith.constant 0 : i32
    %c0_i32_0 = arith.constant 0 : i32
    %c0_i32_1 = arith.constant 0 : i32
    return %c0_i32, %c0_i32_0 : i32, i32
  }
  func.func @transform_9(%arg0: i32) -> (i32, i32) {
    %c0_i32 = arith.constant 0 : i32
    %c0_i32_0 = arith.constant 0 : i32
    %c0_i32_1 = arith.constant 0 : i32
    return %c0_i32, %c0_i32_0 : i32, i32
  }
  func.func @transform_10(%arg0: i32) -> (i32, i32) {
    %c0_i32 = arith.constant 0 : i32
    %c0_i32_0 = arith.constant 0 : i32
    %c0_i32_1 = arith.constant 0 : i32
    return %c0_i32, %c0_i32_0 : i32, i32
  }
  func.func @transform_11(%arg0: i32) -> (i32, i32) {
    %c0_i32 = arith.constant 0 : i32
    %c0_i32_0 = arith.constant 0 : i32
    return %arg0, %c0_i32 : i32, i32
  }
}

</mosaic_0001>

<bundles_post_ra>
// kernel: tpu_custom_call.1
= control target key start
LH: loop header
LB: loop body
LE: loop exit
PB: predicated region body
PF: predicated region fallthrough
CT: control target
= control target key end

     0   :  { %vm124_vm0 = vcmask 392192   ;;  %s5060_s0 = inlined_call_operand.vmem [shape: f32[1,576,48], index: 0, kind: input, shape index: {}]   ;;  %s5061_s1 = inlined_call_operand.vmem [shape: f32[48,32], index: 1, kind: input, shape index: {}]   ;;  %s5062_s2 = inlined_call_operand.vmem [shape: f32[1,32], index: 2, kind: input, shape index: {}]   ;;  %s5063_s3 = inlined_call_operand.vmem [shape: f32[3,32,64], index: 3, kind: input, shape index: {}]   ;;  %s5064_s4 = inlined_call_operand.vmem [shape: f32[1,64], index: 4, kind: input, shape index: {}]   ;;  %s5065_s5 = inlined_call_operand.vmem [shape: f32[1536,64], index: 5, kind: input, shape index: {}]   ;;  %s5066_s6 = inlined_call_operand.vmem [shape: f32[1,64], index: 6, kind: input, shape index: {}]   ;;  %s5067_s7 = inlined_call_operand.vmem [shape: f32[64,7], index: 7, kind: input, shape index: {}]   ;;  %s5068_s8 = inlined_call_operand.vmem [shape: f32[1,7], index: 8, kind: input, shape index: {}]   ;;  %s5069_s9 = inlined_call_operand.vmem [shape: f32[1,6], index: 9, kind: input, shape index: {}]   ;;  %s5070_s10 = inlined_call_operand.vmem [shape: f32[1,6], index: 10, kind: input, shape index: {}]   ;;  %s5071_s11 = inlined_call_operand.hbm [shape: f32[8,7], index: 11, kind: output, shape index: {}]  }
   0x1   :  { %v111_v0 = vld [vmem:[%s5061_s1] sm:$0xff]  ;;  %v112_v1 = vld [vmem:[%s5061_s1 + $0x8] sm:$0xff]  ;;  %v113_v2 = vld [vmem:[%s5061_s1 + $0x10] sm:$0xff] }
   0x2   :  { %v3347_v3 = vpack.c.bf16 %v112_v1, %v111_v0  ;;  %v114_v4 = vld [vmem:[%s5061_s1 + $0x18] sm:$0xff]  ;;  %v115_v6 = vld [vmem:[%s5061_s1 + $0x20] sm:$0xff]  ;;  %v116_v7 = vld [vmem:[%s5061_s1 + $0x28] sm:$0xff] }
   0x3   :  { %v3351_v5 = vpack.c.bf16 %v114_v4, %v113_v2  ;;  %v39_v8 = vld [vmem:[%s5060_s0] sm:$0xff]  ;;  %v3355_v9 = vpack.c.bf16 %v116_v7, %v115_v6  ;;  %v40_v10 = vld [vmem:[%s5060_s0 + $0x8] sm:$0xff]  ;;  %v41_v11 = vld [vmem:[%s5060_s0 + $0x10] sm:$0xff] }
   0x4   :  { %3348 = vmatprep.subr.bf16.mxu0 %v3347_v3  ;;  %3088 = vmatprep.mubr.msk.f32.mxu0 %vm124_vm0, %v39_v8  ;;  %v42_v12 = vld [vmem:[%s5060_s0 + $0x18] sm:$0xff]  ;;  %v43_v13 = vld [vmem:[%s5060_s0 + $0x20] sm:$0xff]  ;;  %v44_v14 = vld [vmem:[%s5060_s0 + $0x28] sm:$0xff] }
   0x5   :  { %3350 = vmatpush3.bf16.msra.mxu0 %v3347_v3  ;;  %v45_v15 = vld [vmem:[%s5060_s0 + $0x30] sm:$0xff]  ;;  %v46_v16 = vld [vmem:[%s5060_s0 + $0x38] sm:$0xff]  ;;  %v47_v17 = vld [vmem:[%s5060_s0 + $0x40] sm:$0xff] }
   0x6   :  { %3352 = vmatprep.subr.bf16.mxu0 %v3351_v5 }
   0x9   :  { %3354 = vmatpush3.bf16.msra.mxu0 %v3351_v5 }
   0xa   :  { %3356 = vmatprep.subr.bf16.mxu0 %v3355_v9 }
   0xd   :  { %3358 = vmatpush3.bf16.msra.mxu0 %v3355_v9 }
  0x10   :  { %3089 = vmatmul.mubr.msk.f32.vlgmr.msra.gmra.mrb[0].mxu0 %vm124_vm0, %v40_v10 }
  0x11   :  { %3091 = vmatprep.mubr.msk.f32.mxu0 %vm124_vm0, %v41_v11 }
  0x14   :  { %3092 = vmatmul.mubr.msk.f32.gmra.mrb[2].mxu0 %vm124_vm0, %v42_v12 }
  0x15   :  { %3094 = vmatprep.mubr.msk.f32.mxu0 %vm124_vm0, %v43_v13 }
  0x18   :  { %3095 = vmatmul.mubr.msk.f32.gmra.mrb[4].mxu0 %vm124_vm0, %v44_v14 }
  0x19   :  { %3097 = vmatprep.mubr.msk.f32.mxu0 %vm124_vm0, %v45_v15 }
  0x1a   :  { %16 = vsyncpa [#allocation4], 0  ;;  %v48_v18 = vld [vmem:[%s5060_s0 + $0x48] sm:$0xff]  ;;  %v49_v19 = vld [vmem:[%s5060_s0 + $0x50] sm:$0xff]  ;;  %vm847_vm1 = vcmask 261120   ;;  %vm1703_vm2 = vcmask 523264  }
  0x1b   :  { %v50_v20 = vld [vmem:[%s5060_s0 + $0x58] sm:$0xff]  ;;  %v51_v21 = vld [vmem:[%s5060_s0 + $0x60] sm:$0xff]  ;;  %v52_v22 = vld [vmem:[%s5060_s0 + $0x68] sm:$0xff]  ;;  %s3666_s13 = smov 64   ;;  %vm1709_vm3 = vcmask 1048064   ;;  %vm3668_vm4 = vmmov 0  }
  0x1c   :  { %3098 = vmatmul.mubr.msk.f32.gmra.mrb[6].mxu0 %vm124_vm0, %v46_v16  ;;  %v53_v23 = vld [vmem:[%s5060_s0 + $0x70] sm:$0xff]  ;;  %v54_v24 = vld [vmem:[%s5060_s0 + $0x78] sm:$0xff]  ;;  %v55_v25 = vld [vmem:[%s5060_s0 + $0x80] sm:$0xff]  ;;  %vm2514_vm5 = vcmask 48128   ;;  %vm2520_vm6 = vcmask 56368  }
  0x1d   :  { %3100 = vmatprep.mubr.msk.f32.mxu0 %vm124_vm0, %v47_v17  ;;  %v56_v26 = vld [vmem:[%s5060_s0 + $0x88] sm:$0xff]  ;;  %v57_v27 = vld [vmem:[%s5060_s0 + $0x90] sm:$0xff]  ;;  %v58_v28 = vld [vmem:[%s5060_s0 + $0x98] sm:$0xff] }
  0x1e   :  { %v59_v29 = vld [vmem:[%s5060_s0 + $0xa0] sm:$0xff]  ;;  %v60_v30 = vld [vmem:[%s5060_s0 + $0xa8] sm:$0xff]  ;;  %v61_v31 = vld [vmem:[%s5060_s0 + $0xb0] sm:$0xff] }
  0x1f   :  { %v62_v32 = vld [vmem:[%s5060_s0 + $0xb8] sm:$0xff]  ;;  %v63_v33 = vld [vmem:[%s5060_s0 + $0xc0] sm:$0xff]  ;;  %v64_v34 = vld [vmem:[%s5060_s0 + $0xc8] sm:$0xff] }
  0x20   :  { %3101 = vmatmul.mubr.msk.f32.gmra.mrb[8].mxu0 %vm124_vm0, %v48_v18  ;;  %v65_v35 = vld [vmem:[%s5060_s0 + $0xd0] sm:$0xff]  ;;  %v66_v36 = vld [vmem:[%s5060_s0 + $0xd8] sm:$0xff]  ;;  %v67_v37 = vld [vmem:[%s5060_s0 + $0xe0] sm:$0xff] }
  0x21   :  { %3103 = vmatprep.mubr.msk.f32.mxu0 %vm124_vm0, %v49_v19  ;;  %v68_v38 = vld [vmem:[%s5060_s0 + $0xe8] sm:$0xff]  ;;  %v69_v39 = vld [vmem:[%s5060_s0 + $0xf0] sm:$0xff]  ;;  %v70_v40 = vld [vmem:[%s5060_s0 + $0xf8] sm:$0xff] }
  0x22   :  { %v71_v41 = vld [vmem:[%s5060_s0 + $0x100] sm:$0xff]  ;;  %v72_v42 = vld [vmem:[%s5060_s0 + $0x108] sm:$0xff]  ;;  %v73_v43 = vld [vmem:[%s5060_s0 + $0x110] sm:$0xff] }
  0x23   :  { %v74_v44 = vld [vmem:[%s5060_s0 + $0x118] sm:$0xff]  ;;  %v75_v45 = vld [vmem:[%s5060_s0 + $0x120] sm:$0xff]  ;;  %v76_v46 = vld [vmem:[%s5060_s0 + $0x128] sm:$0xff] }
  0x24   :  { %3104 = vmatmul.mubr.msk.f32.gmra.mrb[10].mxu0 %vm124_vm0, %v50_v20  ;;  %v77_v47 = vld [vmem:[%s5060_s0 + $0x130] sm:$0xff]  ;;  %v78_v48 = vld [vmem:[%s5060_s0 + $0x138] sm:$0xff]  ;;  %v79_v49 = vld [vmem:[%s5060_s0 + $0x140] sm:$0xff] }
  0x25   :  { %3106 = vmatprep.mubr.msk.f32.mxu0 %vm124_vm0, %v51_v21  ;;  %v80_v50 = vld [vmem:[%s5060_s0 + $0x148] sm:$0xff]  ;;  %v81_v51 = vld [vmem:[%s5060_s0 + $0x150] sm:$0xff]  ;;  %v82_v52 = vld [vmem:[%s5060_s0 + $0x158] sm:$0xff] }
  0x26   :  { %v83_v53 = vld [vmem:[%s5060_s0 + $0x160] sm:$0xff]  ;;  %v84_v54 = vld [vmem:[%s5060_s0 + $0x168] sm:$0xff]  ;;  %v85_v55 = vld [vmem:[%s5060_s0 + $0x170] sm:$0xff] }
  0x27   :  { %v86_v56 = vld [vmem:[%s5060_s0 + $0x178] sm:$0xff]  ;;  %v87_v57 = vld [vmem:[%s5060_s0 + $0x180] sm:$0xff]  ;;  %v88_v58 = vld [vmem:[%s5060_s0 + $0x188] sm:$0xff] }
  0x28   :  { %3107 = vmatmul.mubr.msk.f32.gmra.mrb[12].mxu0 %vm124_vm0, %v52_v22  ;;  %v89_v59 = vld [vmem:[%s5060_s0 + $0x190] sm:$0xff]  ;;  %v90_v60 = vld [vmem:[%s5060_s0 + $0x198] sm:$0xff]  ;;  %v91_v61 = vld [vmem:[%s5060_s0 + $0x1a0] sm:$0xff] }
  0x29   :  { %3109 = vmatprep.mubr.msk.f32.mxu0 %vm124_vm0, %v53_v23  ;;  %v92_v62 = vld [vmem:[%s5060_s0 + $0x1a8] sm:$0xff]  ;;  %v93_v63 = vld [vmem:[%s5060_s0 + $0x1b0] sm:$0xff]  ;;  %v94_v0 = vld [vmem:[%s5060_s0 + $0x1b8] sm:$0xff] }
  0x2a   :  { %v95_v1 = vld [vmem:[%s5060_s0 + $0x1c0] sm:$0xff]  ;;  %v96_v2 = vld [vmem:[%s5060_s0 + $0x1c8] sm:$0xff]  ;;  %v97_v3 = vld [vmem:[%s5060_s0 + $0x1d0] sm:$0xff] }
  0x2b   :  { %v98_v4 = vld [vmem:[%s5060_s0 + $0x1d8] sm:$0xff]  ;;  %v99_v5 = vld [vmem:[%s5060_s0 + $0x1e0] sm:$0xff]  ;;  %v100_v6 = vld [vmem:[%s5060_s0 + $0x1e8] sm:$0xff] }
  0x2c   :  { %3110 = vmatmul.mubr.msk.f32.gmra.mrb[14].mxu0 %vm124_vm0, %v54_v24  ;;  %v101_v7 = vld [vmem:[%s5060_s0 + $0x1f0] sm:$0xff]  ;;  %v102_v8 = vld [vmem:[%s5060_s0 + $0x1f8] sm:$0xff]  ;;  %v103_v9 = vld [vmem:[%s5060_s0 + $0x200] sm:$0xff] }
  0x2d   :  { %3112 = vmatprep.mubr.msk.f32.mxu0 %vm124_vm0, %v55_v25  ;;  %v104_v10 = vld [vmem:[%s5060_s0 + $0x208] sm:$0xff]  ;;  %v105_v11 = vld [vmem:[%s5060_s0 + $0x210] sm:$0xff]  ;;  %v2609_v12 = vld [vmem:[%s5063_s3 + $0x20] sm:$0xff] }
  0x2e   :  { %v2610_v13 = vld [vmem:[%s5063_s3 + $0x28] sm:$0xff]  ;;  %v106_v15 = vld [vmem:[%s5060_s0 + $0x218] sm:$0xff]  ;;  %v107_v16 = vld [vmem:[%s5060_s0 + $0x220] sm:$0xff] }
  0x2f   :  { %v3359_v14 = vpack.c.bf16 %v2610_v13, %v2609_v12  ;;  %v2611_v17 = vld [vmem:[%s5063_s3 + $0x30] sm:$0xff]  ;;  %v2612_v18 = vld [vmem:[%s5063_s3 + $0x38] sm:$0xff]  ;;  %v108_v20 = vld [vmem:[%s5060_s0 + $0x228] sm:$0xff] }
  0x30   :  { %3113 = vmatmul.mubr.msk.f32.gmra.mrb[16].mxu0 %vm124_vm0, %v56_v26  ;;  %v3363_v19 = vpack.c.bf16 %v2612_v18, %v2611_v17  ;;  %v109_v21 = vld [vmem:[%s5060_s0 + $0x230] sm:$0xff]  ;;  %v110_v22 = vld [vmem:[%s5060_s0 + $0x238] sm:$0xff]  ;;  %v838_v23 = vld [vmem:[%s5063_s3] sm:$0xff] }
  0x31   :  { %3115 = vmatprep.mubr.msk.f32.mxu0 %vm124_vm0, %v57_v27  ;;  %3360 = vmatprep.subr.bf16.mxu1 %v3359_v14  ;;  %v839_v24 = vld [vmem:[%s5063_s3 + $0x8] sm:$0xff] }
  0x32   :  { %3362 = vmatpush3.bf16.msra.mxu1 %v3359_v14  ;;  %v3367_v25 = vpack.c.bf16 %v839_v24, %v838_v23 }
  0x33   :  { %3364 = vmatprep.subr.bf16.mxu1 %v3363_v19 }
  0x34   :  { %3116 = vmatmul.mubr.msk.f32.gmra.mrb[18].mxu0 %vm124_vm0, %v58_v28 }
  0x35   :  { %3118 = vmatprep.mubr.msk.f32.mxu0 %vm124_vm0, %v59_v29 }
  0x36   :  { %3366 = vmatpush3.bf16.msra.mxu1 %v3363_v19 }
  0x37   :  { %3368 = vmatprep.subr.bf16.mxu1 %v3367_v25 }
  0x38   :  { %3119 = vmatmul.mubr.msk.f32.gmra.mrb[20].mxu0 %vm124_vm0, %v60_v30 }
  0x39   :  { %3121 = vmatprep.mubr.msk.f32.mxu0 %vm124_vm0, %v61_v31 }
  0x3c   :  { %3122 = vmatmul.mubr.msk.f32.gmra.mrb[22].mxu0 %vm124_vm0, %v62_v32 }
  0x3d   :  { %3124 = vmatprep.mubr.msk.f32.mxu0 %vm124_vm0, %v63_v33 }
  0x40   :  { %3125 = vmatmul.mubr.msk.f32.gmra.mrb[24].mxu0 %vm124_vm0, %v64_v34 }
  0x41   :  { %3127 = vmatprep.mubr.msk.f32.mxu0 %vm124_vm0, %v65_v35 }
  0x44   :  { %3128 = vmatmul.mubr.msk.f32.gmra.mrb[26].mxu0 %vm124_vm0, %v66_v36 }
  0x45   :  { %3130 = vmatprep.mubr.msk.f32.mxu0 %vm124_vm0, %v67_v37 }
  0x48   :  { %3131 = vmatmul.mubr.msk.f32.gmra.mrb[28].mxu0 %vm124_vm0, %v68_v38 }
  0x49   :  { %3133 = vmatprep.mubr.msk.f32.mxu0 %vm124_vm0, %v69_v39 }
  0x4c   :  { %3134 = vmatmul.mubr.msk.f32.gmra.mrb[30].mxu0 %vm124_vm0, %v70_v40 }
  0x4d   :  { %3136 = vmatprep.mubr.msk.f32.mxu0 %vm124_vm0, %v71_v41 }
  0x50   :  { %3137 = vmatmul.mubr.msk.f32.gmra.mrb[32].mxu0 %vm124_vm0, %v72_v42 }
  0x51   :  { %3139 = vmatprep.mubr.msk.f32.mxu0 %vm124_vm0, %v73_v43 }
  0x54   :  { %3140 = vmatmul.mubr.msk.f32.gmra.mrb[34].mxu0 %vm124_vm0, %v74_v44 }
  0x55   :  { %3142 = vmatprep.mubr.msk.f32.mxu0 %vm124_vm0, %v75_v45 }
  0x58   :  { %3143 = vmatmul.mubr.msk.f32.gmra.mrb[36].mxu0 %vm124_vm0, %v76_v46 }
  0x59   :  { %3145 = vmatprep.mubr.msk.f32.mxu0 %vm124_vm0, %v77_v47 }
  0x5c   :  { %3146 = vmatmul.mubr.msk.f32.gmra.mrb[38].mxu0 %vm124_vm0, %v78_v48 }
  0x5d   :  { %3148 = vmatprep.mubr.msk.f32.mxu0 %vm124_vm0, %v79_v49 }
  0x60   :  { %3149 = vmatmul.mubr.msk.f32.gmra.mrb[40].mxu0 %vm124_vm0, %v80_v50  ;;  %v4106_v50 = vld [vmem:[%s5062_s2] ss:$0 sm:$0xff] }
  0x61   :  { %3151 = vmatprep.mubr.msk.f32.mxu0 %vm124_vm0, %v81_v51 }
  0x64   :  { %3152 = vmatmul.mubr.msk.f32.gmra.mrb[42].mxu0 %vm124_vm0, %v82_v52 }
  0x65   :  { %3154 = vmatprep.mubr.msk.f32.mxu0 %vm124_vm0, %v83_v53 }
  0x68   :  { %3155 = vmatmul.mubr.msk.f32.gmra.mrb[44].mxu0 %vm124_vm0, %v84_v54 }
  0x69   :  { %3157 = vmatprep.mubr.msk.f32.mxu0 %vm124_vm0, %v85_v55  ;;  %v840_v55 = vld [vmem:[%s5063_s3 + $0x10] sm:$0xff] }
  0x6c   :  { %3158 = vmatmul.mubr.msk.f32.gmra.mrb[46].mxu0 %vm124_vm0, %v86_v56  ;;  %v841_v56 = vld [vmem:[%s5063_s3 + $0x18] sm:$0xff] }
  0x6d   :  { %3160 = vmatprep.mubr.msk.f32.mxu0 %vm124_vm0, %v87_v57 }
  0x70   :  { %3161 = vmatmul.mubr.msk.f32.gmra.mrb[48].mxu0 %vm124_vm0, %v88_v58 }
  0x71   :  { %3163 = vmatprep.mubr.msk.f32.mxu0 %vm124_vm0, %v89_v59 }
  0x74   :  { %3164 = vmatmul.mubr.msk.f32.gmra.mrb[50].mxu0 %vm124_vm0, %v90_v60 }
  0x75   :  { %3166 = vmatprep.mubr.msk.f32.mxu0 %vm124_vm0, %v91_v61 }
  0x78   :  { %3167 = vmatmul.mubr.msk.f32.gmra.mrb[52].mxu0 %vm124_vm0, %v92_v62  ;;  %v3371_v62 = vpack.c.bf16 %v841_v56, %v840_v55 }
  0x79   :  { %3169 = vmatprep.mubr.msk.f32.mxu0 %vm124_vm0, %v93_v63 }
  0x7c   :  { %3170 = vmatmul.mubr.msk.f32.gmra.mrb[54].mxu0 %vm124_vm0, %v94_v0  ;;  %v2661_v0 = vld [vmem:[%s5063_s3 + $0x40] sm:$0xff] }
  0x7d   :  { %3172 = vmatprep.mubr.msk.f32.mxu0 %vm124_vm0, %v95_v1  ;;  %v2662_v1 = vld [vmem:[%s5063_s3 + $0x48] sm:$0xff] }
  0x80   :  { %3173 = vmatmul.mubr.msk.f32.gmra.mrb[56].mxu0 %vm124_vm0, %v96_v2 }
  0x81   :  { %3175 = vmatprep.mubr.msk.f32.mxu0 %vm124_vm0, %v97_v3 }
  0x84   :  { %3176 = vmatmul.mubr.msk.f32.gmra.mrb[58].mxu0 %vm124_vm0, %v98_v4 }
  0x85   :  { %3178 = vmatprep.mubr.msk.f32.mxu0 %vm124_vm0, %v99_v5 }
  0x88   :  { %3179 = vmatmul.mubr.msk.f32.gmra.mrb[60].mxu0 %vm124_vm0, %v100_v6 }
  0x89   :  { %3181 = vmatprep.mubr.msk.f32.mxu0 %vm124_vm0, %v101_v7  ;;  %v4127_v7 = vpack.c.bf16 %v2662_v1, %v2661_v0 }
  0x8c   :  { %3182 = vmatmul.mubr.msk.f32.gmra.mrb[62].mxu0 %vm124_vm0, %v102_v8 }
  0x8d   :  { %3184 = vmatprep.mubr.msk.f32.mxu0 %vm124_vm0, %v103_v9 }
  0x90   :  { %3185 = vmatmul.mubr.msk.f32.gmra.mrb[64].mxu0 %vm124_vm0, %v104_v10 }
  0x91   :  { %3187 = vmatprep.mubr.msk.f32.mxu0 %vm124_vm0, %v105_v11 }
  0x94   :  { %3188 = vmatmul.mubr.msk.f32.gmra.mrb[66].mxu0 %vm124_vm0, %v106_v15 }
  0x95   :  { %3190 = vmatprep.mubr.msk.f32.mxu0 %vm124_vm0, %v107_v16 }
  0x98   :  { %3191 = vmatmul.mubr.msk.f32.gmra.mrb[68].mxu0 %vm124_vm0, %v108_v20 }
  0x99   :  { %3193 = vmatprep.mubr.msk.f32.mxu0 %vm124_vm0, %v109_v21  ;;  %v1837_v21 = vld [vmem:[%s5065_s5 + $0x180] sm:$0xff] }
  0x9c   :  { %3194 = vmatmul.mubr.msk.f32.gmra.mrb[70].mxu0 %vm124_vm0, %v110_v22  ;;  %v1838_v22 = vld [vmem:[%s5065_s5 + $0x188] sm:$0xff] }
  0xe3   :  { %v4055_v26 = vpop.f32.mrb[0].mxu0 }
  0xe4   :  { %v4057_v27 = vpop.f32.mrb[1].mxu0 }
  0xe7   :  { %v4059_v28 = vpop.f32.mrb[2].mxu0 }
  0xe8   :  { %v4061_v29 = vpop.f32.mrb[3].mxu0 }
  0xeb   :  { %v4063_v30 = vpop.f32.mrb[4].mxu0 }
  0xec   :  { %v4065_v31 = vpop.f32.mrb[5].mxu0 }
  0xef   :  { %v4067_v32 = vpop.f32.mrb[6].mxu0 }
  0xf0   :  { %v4069_v33 = vpop.f32.mrb[7].mxu0 }
  0xf3   :  { %v4071_v34 = vpop.f32.mrb[8].mxu0 }
  0xf4   :  { %v4073_v35 = vpop.f32.mrb[9].mxu0 }
  0xf7   :  { %v4075_v36 = vpop.f32.mrb[10].mxu0 }
  0xf8   :  { %v4077_v37 = vpop.f32.mrb[11].mxu0 }
  0xfb   :  { %v4079_v38 = vpop.f32.mrb[12].mxu0 }
  0xfc   :  { %v4081_v39 = vpop.f32.mrb[13].mxu0 }
  0xff   :  { %v4083_v40 = vpop.f32.mrb[14].mxu0 }
 0x100   :  { %v4085_v41 = vpop.f32.mrb[15].mxu0 }
 0x103   :  { %v4087_v42 = vpop.f32.mrb[16].mxu0 }
 0x104   :  { %v4089_v43 = vpop.f32.mrb[17].mxu0 }
 0x107   :  { %v4091_v44 = vpop.f32.mrb[18].mxu0 }
 0x108   :  { %v4093_v45 = vpop.f32.mrb[19].mxu0 }
 0x10b   :  { %v4095_v46 = vpop.f32.mrb[20].mxu0 }
 0x10c   :  { %v4097_v47 = vpop.f32.mrb[21].mxu0 }
 0x10f   :  { %v4099_v48 = vpop.f32.mrb[22].mxu0 }
 0x110   :  { %v4101_v49 = vpop.f32.mrb[23].mxu0 }
 0x113   :  { %v3126_v51 = vpop.f32.mrb[24].mxu0 }
 0x114   :  { %v533_v52 = vadd.f32 %v3126_v51, %v4106_v50  ;;  %v527_v53 = vpop.f32.mrb[25].mxu0 }
 0x115   :  { %v528_v54 = vadd.f32 %v4106_v50, %v527_v53 }
 0x116   :  { %v791_v59 = vmax.f32 %v533_v52, 0.0 }
 0x117   :  { %v790_v57 = vmax.f32 %v528_v54, 0.0  ;;  %v3129_v58 = vpop.f32.mrb[26].mxu0 }
 0x118   :  { %v543_v60 = vadd.f32 %v3129_v58, %v4106_v50  ;;  %v537_v61 = vpop.f32.mrb[27].mxu0 }
 0x119   :  { %v538_v63 = vadd.f32 %v4106_v50, %v537_v61  ;;  %3204 = vmatprep.mubr.msk.f32.mxu1 %vm847_vm1, %v790_v57 }
 0x11a   :  { %3205 = vmatmul.mubr.msk.f32.vlgmr.msra.gmra.mrb[0].mxu1 %vm847_vm1, %v791_v59  ;;  %v793_v4 = vmax.f32 %v543_v60, 0.0 }
 0x11b   :  { %v792_v2 = vmax.f32 %v538_v63, 0.0  ;;  %3370 = vmatpush3.bf16.msra.mxu1 %v3367_v25  ;;  %v3132_v3 = vpop.f32.mrb[28].mxu0  ;;  %v3415_v25 = vpack.c.bf16 %v1838_v22, %v1837_v21 }
 0x11c   :  { %v553_v5 = vadd.f32 %v3132_v3, %v4106_v50  ;;  %v547_v6 = vpop.f32.mrb[29].mxu0  ;;  %3372 = vmatprep.subr.bf16.mxu1 %v3371_v62 }
 0x11d   :  { %v548_v8 = vadd.f32 %v4106_v50, %v547_v6  ;;  %3207 = vmatprep.mubr.msk.f32.mxu1 %vm847_vm1, %v792_v2  ;;  %3416 = vmatprep.subr.bf16.mxu0 %v3415_v25 }
 0x11e   :  { %3208 = vmatmul.mubr.msk.f32.gmra.mrb[2].mxu1 %vm847_vm1, %v793_v4  ;;  %v795_v11 = vmax.f32 %v553_v5, 0.0 }
 0x11f   :  { %v794_v9 = vmax.f32 %v548_v8, 0.0  ;;  %v3135_v10 = vpop.f32.mrb[30].mxu0  ;;  %3374 = vmatpush3.bf16.msra.mxu1 %v3371_v62 }
 0x120   :  { %v563_v12 = vadd.f32 %v3135_v10, %v4106_v50  ;;  %v557_v13 = vpop.f32.mrb[31].mxu0  ;;  %3376 = vmatprep.subr.bf16.mxu1 %v4127_v7 }
 0x121   :  { %v558_v14 = vadd.f32 %v4106_v50, %v557_v13  ;;  %3210 = vmatprep.mubr.msk.f32.mxu1 %vm847_vm1, %v794_v9 }
 0x122   :  { %3211 = vmatmul.mubr.msk.f32.gmra.mrb[4].mxu1 %vm847_vm1, %v795_v11  ;;  %v797_v17 = vmax.f32 %v563_v12, 0.0 }
 0x123   :  { %v796_v15 = vmax.f32 %v558_v14, 0.0  ;;  %v3138_v16 = vpop.f32.mrb[32].mxu0 }
 0x124   :  { %v573_v18 = vadd.f32 %v3138_v16, %v4106_v50  ;;  %v567_v19 = vpop.f32.mrb[33].mxu0 }
 0x125   :  { %v568_v20 = vadd.f32 %v4106_v50, %v567_v19  ;;  %3213 = vmatprep.mubr.msk.f32.mxu1 %vm847_vm1, %v796_v15 }
 0x126   :  { %3214 = vmatmul.mubr.msk.f32.gmra.mrb[6].mxu1 %vm847_vm1, %v797_v17  ;;  %v799_v51 = vmax.f32 %v573_v18, 0.0 }
 0x127   :  { %v798_v23 = vmax.f32 %v568_v20, 0.0  ;;  %v3141_v24 = vpop.f32.mrb[34].mxu0 }
 0x128   :  { %v583_v52 = vadd.f32 %v3141_v24, %v4106_v50  ;;  %v577_v53 = vpop.f32.mrb[35].mxu0 }
 0x129   :  { %v578_v54 = vadd.f32 %v4106_v50, %v577_v53  ;;  %3216 = vmatprep.mubr.msk.f32.mxu1 %vm847_vm1, %v798_v23 }
 0x12a   :  { %3217 = vmatmul.mubr.msk.f32.gmra.mrb[8].mxu1 %vm847_vm1, %v799_v51  ;;  %v801_v57 = vmax.f32 %v583_v52, 0.0  ;;  %v408_v52 = vadd.f32 %v4106_v50, %v4057_v27  ;;  %v2663_v27 = vld [vmem:[%s5063_s3 + $0x50] sm:$0xff] }
 0x12b   :  { %v800_v55 = vmax.f32 %v578_v54, 0.0  ;;  %v3144_v56 = vpop.f32.mrb[36].mxu0 }
 0x12c   :  { %v593_v58 = vadd.f32 %v3144_v56, %v4106_v50  ;;  %v587_v59 = vpop.f32.mrb[37].mxu0  ;;  %v413_v56 = vadd.f32 %v4055_v26, %v4106_v50 }
 0x12d   :  { %v588_v60 = vadd.f32 %v4106_v50, %v587_v59  ;;  %3219 = vmatprep.mubr.msk.f32.mxu1 %vm847_vm1, %v800_v55  ;;  %v766_v59 = vmax.f32 %v408_v52, 0.0 }
 0x12e   :  { %3220 = vmatmul.mubr.msk.f32.gmra.mrb[10].mxu1 %vm847_vm1, %v801_v57  ;;  %v803_v63 = vmax.f32 %v593_v58, 0.0 }
 0x12f   :  { %v802_v61 = vmax.f32 %v588_v60, 0.0  ;;  %v3147_v62 = vpop.f32.mrb[38].mxu0  ;;  %v418_v60 = vadd.f32 %v4106_v50, %v4061_v29  ;;  %v423_v29 = vadd.f32 %v4059_v28, %v4106_v50 }
 0x130   :  { %v603_v0 = vadd.f32 %v3147_v62, %v4106_v50  ;;  %v597_v1 = vpop.f32.mrb[39].mxu0  ;;  %v767_v62 = vmax.f32 %v413_v56, 0.0 }
 0x131   :  { %v598_v2 = vadd.f32 %v4106_v50, %v597_v1  ;;  %3222 = vmatprep.mubr.msk.f32.mxu1 %vm847_vm1, %v802_v61  ;;  %v2664_v61 = vld [vmem:[%s5063_s3 + $0x58] sm:$0xff]  ;;  %v768_v1 = vmax.f32 %v418_v60, 0.0  ;;  %v503_v60 = vadd.f32 %v4091_v44, %v4106_v50  ;;  %v518_v44 = vadd.f32 %v4106_v50, %v4101_v49 }
 0x132   :  { %3223 = vmatmul.mubr.msk.f32.gmra.mrb[12].mxu1 %vm847_vm1, %v803_v63  ;;  %v805_v5 = vmax.f32 %v603_v0, 0.0  ;;  %v3379_v63 = vpack.c.bf16 %v2664_v61, %v2663_v27 }
 0x133   :  { %v804_v3 = vmax.f32 %v598_v2, 0.0  ;;  %v3150_v4 = vpop.f32.mrb[40].mxu0  ;;  %v428_v2 = vadd.f32 %v4106_v50, %v4065_v31 }
 0x134   :  { %v613_v6 = vadd.f32 %v3150_v4, %v4106_v50  ;;  %v607_v8 = vpop.f32.mrb[41].mxu0  ;;  %v769_v4 = vmax.f32 %v423_v29, 0.0  ;;  %v513_v29 = vadd.f32 %v4095_v46, %v4106_v50 }
 0x135   :  { %v608_v9 = vadd.f32 %v4106_v50, %v607_v8  ;;  %3225 = vmatprep.mubr.msk.f32.mxu1 %vm847_vm1, %v804_v3  ;;  %v438_v8 = vadd.f32 %v4106_v50, %v4069_v33 }
 0x136   :  { %3226 = vmatmul.mubr.msk.f32.gmra.mrb[14].mxu1 %vm847_vm1, %v805_v5  ;;  %v807_v12 = vmax.f32 %v613_v6, 0.0  ;;  %v433_v5 = vadd.f32 %v4063_v30, %v4106_v50  ;;  %v770_v6 = vmax.f32 %v428_v2, 0.0 }
 0x137   :  { %v806_v10 = vmax.f32 %v608_v9, 0.0  ;;  %v3153_v11 = vpop.f32.mrb[42].mxu0  ;;  %v443_v9 = vadd.f32 %v4067_v32, %v4106_v50  ;;  %v772_v30 = vmax.f32 %v438_v8, 0.0  ;;  %v458_v32 = vadd.f32 %v4106_v50, %v4077_v37 }
 0x138   :  { %v623_v13 = vadd.f32 %v3153_v11, %v4106_v50  ;;  %v617_v14 = vpop.f32.mrb[43].mxu0  ;;  %v448_v11 = vadd.f32 %v4106_v50, %v4073_v35 }
 0x139   :  { %v618_v15 = vadd.f32 %v4106_v50, %v617_v14  ;;  %3228 = vmatprep.mubr.msk.f32.mxu1 %vm847_vm1, %v806_v10 }
 0x13a   :  { %3229 = vmatmul.mubr.msk.f32.gmra.mrb[16].mxu1 %vm847_vm1, %v807_v12  ;;  %v809_v18 = vmax.f32 %v623_v13, 0.0  ;;  %v773_v12 = vmax.f32 %v443_v9, 0.0  ;;  %v453_v13 = vadd.f32 %v4071_v34, %v4106_v50  ;;  %v468_v34 = vadd.f32 %v4106_v50, %v4081_v39 }
 0x13b   :  { %v808_v16 = vmax.f32 %v618_v15, 0.0  ;;  %v3156_v17 = vpop.f32.mrb[44].mxu0  ;;  %v774_v15 = vmax.f32 %v448_v11, 0.0 }
 0x13c   :  { %v633_v19 = vadd.f32 %v3156_v17, %v4106_v50  ;;  %v627_v20 = vpop.f32.mrb[45].mxu0  ;;  %v463_v17 = vadd.f32 %v4075_v36, %v4106_v50  ;;  %v478_v36 = vadd.f32 %v4106_v50, %v4085_v41 }
 0x13d   :  { %v628_v21 = vadd.f32 %v4106_v50, %v627_v20  ;;  %3231 = vmatprep.mubr.msk.f32.mxu1 %vm847_vm1, %v808_v16  ;;  %v775_v16 = vmax.f32 %v453_v13, 0.0 }
 0x13e   :  { %3232 = vmatmul.mubr.msk.f32.gmra.mrb[18].mxu1 %vm847_vm1, %v809_v18  ;;  %v811_v24 = vmax.f32 %v633_v19, 0.0  ;;  %v776_v19 = vmax.f32 %v458_v32, 0.0  ;;  %v777_v20 = vmax.f32 %v463_v17, 0.0  ;;  %v780_v52 = vmax.f32 %v478_v36, 0.0 }
 0x13f   :  { %v810_v22 = vmax.f32 %v628_v21, 0.0  ;;  %v3159_v23 = vpop.f32.mrb[46].mxu0  ;;  %v473_v21 = vadd.f32 %v4079_v38, %v4106_v50  ;;  %v488_v38 = vadd.f32 %v4106_v50, %v4089_v43 }
 0x140   :  { %v643_v25 = vadd.f32 %v3159_v23, %v4106_v50  ;;  %v637_v51 = vpop.f32.mrb[47].mxu0  ;;  %v778_v23 = vmax.f32 %v468_v34, 0.0 }
 0x141   :  { %v638_v53 = vadd.f32 %v4106_v50, %v637_v51  ;;  %3234 = vmatprep.mubr.msk.f32.mxu1 %vm847_vm1, %v810_v22 }
 0x142   :  { %3235 = vmatmul.mubr.msk.f32.gmra.mrb[20].mxu1 %vm847_vm1, %v811_v24  ;;  %v813_v57 = vmax.f32 %v643_v25, 0.0  ;;  %v779_v24 = vmax.f32 %v473_v21, 0.0  ;;  %v483_v25 = vadd.f32 %v4083_v40, %v4106_v50  ;;  %v498_v40 = vadd.f32 %v4106_v50, %v4093_v45 }
 0x143   :  { %v812_v54 = vmax.f32 %v638_v53, 0.0  ;;  %v4177_v55 = vpop.f32.mrb[48].mxu0 }
 0x144   :  { %v4181_v58 = vpop.f32.mrb[49].mxu0  ;;  %v781_v53 = vmax.f32 %v483_v25, 0.0  ;;  %v784_v61 = vmax.f32 %v498_v40, 0.0 }
 0x145   :  { %3237 = vmatprep.mubr.msk.f32.mxu1 %vm847_vm1, %v812_v54  ;;  %v493_v54 = vadd.f32 %v4087_v42, %v4106_v50  ;;  %v508_v42 = vadd.f32 %v4106_v50, %v4097_v47  ;;  %v648_v47 = vadd.f32 %v4106_v50, %v4181_v58  ;;  %v653_v58 = vadd.f32 %v4177_v55, %v4106_v50 }
 0x146   :  { %3238 = vmatmul.mubr.msk.f32.gmra.mrb[22].mxu1 %vm847_vm1, %v813_v57  ;;  %v782_v57 = vmax.f32 %v488_v38, 0.0 }
 0x147   :  { %3248 = vmatprep.mubr.msk.f32.mxu1 %vm847_vm1, %v766_v59  ;;  %v4194_v26 = vpop.f32.mrb[50].mxu0  ;;  %v783_v59 = vmax.f32 %v493_v54, 0.0  ;;  %v814_v8 = vmax.f32 %v648_v47, 0.0  ;;  %v1842_v47 = vld [vmem:[%s5065_s5 + $0x1a8] sm:$0xff] }
 0x148   :  { %v4198_v0 = vpop.f32.mrb[51].mxu0  ;;  %v663_v11 = vadd.f32 %v4194_v26, %v4106_v50 }
 0x149   :  { %v658_v49 = vadd.f32 %v4106_v50, %v4198_v0 }
 0x14a   :  { %3249 = vmatmul.mubr.msk.f32.vlgmr.msra.gmra.mrb[0].mxu1 %vm847_vm1, %v767_v62  ;;  %v785_v62 = vmax.f32 %v503_v60, 0.0  ;;  %v817_v0 = vmax.f32 %v663_v11, 0.0 }
 0x14b   :  { %3378 = vmatpush3.bf16.msra.mxu1 %v4127_v7  ;;  %3251 = vmatprep.mubr.msk.f32.mxu1 %vm847_vm1, %v768_v1  ;;  %v4205_v3 = vpop.f32.mrb[52].mxu0  ;;  %v771_v7 = vmax.f32 %v433_v5, 0.0  ;;  %v786_v1 = vmax.f32 %v508_v42, 0.0  ;;  %v523_v5 = vadd.f32 %v4099_v48, %v4106_v50  ;;  %v816_v9 = vmax.f32 %v658_v49, 0.0  ;;  %v1827_v49 = vld [vmem:[%s5065_s5 + $0x130] sm:$0xff] }
 0x14c   :  { %3380 = vmatprep.subr.bf16.mxu1 %v3379_v63  ;;  %v4209_v28 = vpop.f32.mrb[53].mxu0  ;;  %v673_v13 = vadd.f32 %v4205_v3, %v4106_v50 }
 0x14d   :  { %v668_v48 = vadd.f32 %v4106_v50, %v4209_v28 }
 0x14e   :  { %3252 = vmatmul.mubr.msk.f32.gmra.mrb[2].mxu1 %vm847_vm1, %v769_v4  ;;  %v787_v4 = vmax.f32 %v513_v29, 0.0  ;;  %v819_v28 = vmax.f32 %v673_v13, 0.0  ;;  %v1823_v29 = vld [vmem:[%s5065_s5 + $0x110] sm:$0xff]  ;;  %v1848_v13 = vld [vmem:[%s5065_s5 + $0x1d8] sm:$0xff] }
 0x14f   :  { %3254 = vmatprep.mubr.msk.f32.mxu1 %vm847_vm1, %v770_v6  ;;  %3382 = vmatpush3.bf16.msra.mxu1 %v3379_v63  ;;  %v4215_v31 = vpop.f32.mrb[54].mxu0  ;;  %v788_v6 = vmax.f32 %v518_v44, 0.0  ;;  %v1841_v44 = vld [vmem:[%s5065_s5 + $0x1a0] sm:$0xff] }
 0x150   :  { %v4219_v10 = vpop.f32.mrb[55].mxu0  ;;  %v683_v32 = vadd.f32 %v4215_v31, %v4106_v50 }
 0x151   :  { %v678_v55 = vadd.f32 %v4106_v50, %v4219_v10 }
 0x152   :  { %3255 = vmatmul.mubr.msk.f32.gmra.mrb[4].mxu1 %vm847_vm1, %v771_v7  ;;  %v789_v7 = vmax.f32 %v523_v5, 0.0  ;;  %v821_v17 = vmax.f32 %v683_v32, 0.0  ;;  %v1826_v5 = vld [vmem:[%s5065_s5 + $0x128] sm:$0xff]  ;;  %v1805_v32 = vld [vmem:[%s5065_s5 + $0x80] sm:$0xff] }
 0x153   :  { %3257 = vmatprep.mubr.msk.f32.mxu1 %vm847_vm1, %v772_v30  ;;  %v4225_v33 = vpop.f32.mrb[56].mxu0  ;;  %v815_v30 = vmax.f32 %v653_v58, 0.0  ;;  %v1828_v58 = vld [vmem:[%s5065_s5 + $0x138] sm:$0xff] }
 0x154   :  { %v4229_v14 = vpop.f32.mrb[57].mxu0  ;;  %v693_v10 = vadd.f32 %v4225_v33, %v4106_v50 }
 0x155   :  { %v688_v26 = vadd.f32 %v4106_v50, %v4229_v14 }
 0x156   :  { %3258 = vmatmul.mubr.msk.f32.gmra.mrb[6].mxu1 %vm847_vm1, %v773_v12  ;;  %v818_v12 = vmax.f32 %v668_v48, 0.0  ;;  %v1846_v48 = vld [vmem:[%s5065_s5 + $0x1c8] sm:$0xff] }
 0x157   :  { %3260 = vmatprep.mubr.msk.f32.mxu1 %vm847_vm1, %v774_v15  ;;  %v4235_v35 = vpop.f32.mrb[58].mxu0  ;;  %v820_v15 = vmax.f32 %v678_v55, 0.0  ;;  %v1830_v55 = vld [vmem:[%s5065_s5 + $0x148] sm:$0xff] }
 0x158   :  { %v4239_v18 = vpop.f32.mrb[59].mxu0  ;;  %v703_v14 = vadd.f32 %v4235_v35, %v4106_v50 }
 0x159   :  { %v698_v3 = vadd.f32 %v4106_v50, %v4239_v18 }
 0x15a   :  { %3261 = vmatmul.mubr.msk.f32.gmra.mrb[8].mxu1 %vm847_vm1, %v775_v16  ;;  %v822_v16 = vmax.f32 %v688_v26, 0.0  ;;  %v825_v33 = vmax.f32 %v703_v14, 0.0  ;;  %v1832_v26 = vld [vmem:[%s5065_s5 + $0x158] sm:$0xff]  ;;  %v1807_v14 = vld [vmem:[%s5065_s5 + $0x90] sm:$0xff] }
 0x15b   :  { %3263 = vmatprep.mubr.msk.f32.mxu1 %vm847_vm1, %v776_v19  ;;  %v4245_v37 = vpop.f32.mrb[60].mxu0  ;;  %v823_v19 = vmax.f32 %v693_v10, 0.0  ;;  %v824_v34 = vmax.f32 %v698_v3, 0.0  ;;  %v1806_v10 = vld [vmem:[%s5065_s5 + $0x88] sm:$0xff] }
 0x15c   :  { %v4249_v22 = vpop.f32.mrb[61].mxu0 }
 0x15d   :  { %v708_v31 = vadd.f32 %v4106_v50, %v4249_v22 }
 0x15e   :  { %3264 = vmatmul.mubr.msk.f32.gmra.mrb[10].mxu1 %vm847_vm1, %v777_v20  ;;  %v713_v20 = vadd.f32 %v4245_v37, %v4106_v50 }
 0x15f   :  { %3266 = vmatprep.mubr.msk.f32.mxu1 %vm847_vm1, %v778_v23  ;;  %v4255_v39 = vpop.f32.mrb[62].mxu0  ;;  %v826_v18 = vmax.f32 %v708_v31, 0.0 }
 0x160   :  { %v4259_v51 = vpop.f32.mrb[63].mxu0  ;;  %v827_v23 = vmax.f32 %v713_v20, 0.0  ;;  %v723_v35 = vadd.f32 %v4255_v39, %v4106_v50  ;;  %v1791_v20 = vld [vmem:[%s5065_s5 + $0x10] sm:$0xff] }
 0x161   :  { %v718_v21 = vadd.f32 %v4106_v50, %v4259_v51 }
 0x162   :  { %3267 = vmatmul.mubr.msk.f32.gmra.mrb[12].mxu1 %vm847_vm1, %v779_v24  ;;  %v829_v24 = vmax.f32 %v723_v35, 0.0 }
 0x163   :  { %3269 = vmatprep.mubr.msk.f32.mxu1 %vm847_vm1, %v780_v52  ;;  %v4265_v41 = vpop.f32.mrb[64].mxu0  ;;  %v828_v36 = vmax.f32 %v718_v21, 0.0  ;;  %v1809_v21 = vld [vmem:[%s5065_s5 + $0xa0] sm:$0xff] }
 0x164   :  { %v4269_v56 = vpop.f32.mrb[65].mxu0  ;;  %v733_v37 = vadd.f32 %v4265_v41, %v4106_v50 }
 0x165   :  { %v728_v22 = vadd.f32 %v4106_v50, %v4269_v56 }
 0x166   :  { %3270 = vmatmul.mubr.msk.f32.gmra.mrb[14].mxu1 %vm847_vm1, %v781_v53  ;;  %v831_v52 = vmax.f32 %v733_v37, 0.0  ;;  %v1850_v37 = vld [vmem:[%s5065_s5 + $0x1e8] sm:$0xff] }
 0x167   :  { %3272 = vmatprep.mubr.msk.f32.mxu1 %vm847_vm1, %v782_v57  ;;  %v4275_v43 = vpop.f32.mrb[66].mxu0  ;;  %v830_v25 = vmax.f32 %v728_v22, 0.0  ;;  %v1793_v22 = vld [vmem:[%s5065_s5 + $0x20] sm:$0xff] }
 0x168   :  { %v4279_v27 = vpop.f32.mrb[67].mxu0  ;;  %v743_v39 = vadd.f32 %v4275_v43, %v4106_v50 }
 0x169   :  { %v738_v51 = vadd.f32 %v4106_v50, %v4279_v27  ;;  %v1821_v27 = vld [vmem:[%s5065_s5 + $0x100] sm:$0xff] }
 0x16a   :  { %3273 = vmatmul.mubr.msk.f32.gmra.mrb[16].mxu1 %vm847_vm1, %v783_v59  ;;  %v833_v54 = vmax.f32 %v743_v39, 0.0  ;;  %v1833_v39 = vld [vmem:[%s5065_s5 + $0x160] sm:$0xff] }
 0x16b   :  { %3275 = vmatprep.mubr.msk.f32.mxu1 %vm847_vm1, %v784_v61  ;;  %v4285_v45 = vpop.f32.mrb[68].mxu0  ;;  %v832_v38 = vmax.f32 %v738_v51, 0.0  ;;  %v1822_v61 = vld [vmem:[%s5065_s5 + $0x108] sm:$0xff] }
 0x16c   :  { %v4289_v63 = vpop.f32.mrb[69].mxu0  ;;  %v753_v41 = vadd.f32 %v4285_v45, %v4106_v50  ;;  %v3417_v42 = vpack.c.bf16 %v1822_v61, %v1821_v27  ;;  %v1840_v45 = vld [vmem:[%s5065_s5 + $0x198] sm:$0xff]  ;;  %v1794_v51 = vld [vmem:[%s5065_s5 + $0x28] sm:$0xff] }
 0x16d   :  { %v748_v53 = vadd.f32 %v4106_v50, %v4289_v63  ;;  %v1824_v63 = vld [vmem:[%s5065_s5 + $0x118] sm:$0xff] }
 0x16e   :  { %3276 = vmatmul.mubr.msk.f32.gmra.mrb[18].mxu1 %vm847_vm1, %v785_v62  ;;  %v835_v40 = vmax.f32 %v753_v41, 0.0  ;;  %3418 = vmatpush3.bf16.msra.mxu0 %v3417_v42  ;;  %v3393_v41 = vpack.c.bf16 %v1794_v51, %v1793_v22  ;;  %v1797_v42 = vld [vmem:[%s5065_s5 + $0x40] sm:$0xff] }
 0x16f   :  { %3278 = vmatprep.mubr.msk.f32.mxu1 %vm847_vm1, %v786_v1  ;;  %v4297_v2 = vpop.f32.mrb[70].mxu0  ;;  %v834_v56 = vmax.f32 %v748_v53, 0.0  ;;  %v3421_v1 = vpack.c.bf16 %v1824_v63, %v1823_v29  ;;  %v1811_v53 = vld [vmem:[%s5065_s5 + $0xb0] sm:$0xff] }
 0x170   :  { %v4301_v46 = vpop.f32.mrb[71].mxu0  ;;  %v763_v43 = vadd.f32 %v4297_v2, %v4106_v50  ;;  %v3423_v2 = vpack.c.bf16 %v1842_v47, %v1841_v44  ;;  %v1800_v44 = vld [vmem:[%s5065_s5 + $0x58] sm:$0xff] }
 0x171   :  { %v758_v57 = vadd.f32 %v4106_v50, %v4301_v46  ;;  %v1839_v50 = vld [vmem:[%s5065_s5 + $0x190] sm:$0xff] }
 0x172   :  { %3279 = vmatmul.mubr.msk.f32.gmra.mrb[20].mxu1 %vm847_vm1, %v787_v4  ;;  %v837_v60 = vmax.f32 %v763_v43, 0.0  ;;  %v3419_v62 = vpack.c.bf16 %v1840_v45, %v1839_v50  ;;  %v1825_v4 = vld [vmem:[%s5065_s5 + $0x120] sm:$0xff]  ;;  %v1796_v43 = vld [vmem:[%s5065_s5 + $0x38] sm:$0xff]  ;;  %v1798_v50 = vld [vmem:[%s5065_s5 + $0x48] sm:$0xff] }
 0x173   :  { %3281 = vmatprep.mubr.msk.f32.mxu1 %vm847_vm1, %v788_v6  ;;  %v836_v59 = vmax.f32 %v758_v57, 0.0  ;;  %v3425_v46 = vpack.c.bf16 %v1826_v5, %v1825_v4  ;;  %v1843_v6 = vld [vmem:[%s5065_s5 + $0x1b0] sm:$0xff]  ;;  %v3401_v29 = vpack.c.bf16 %v1798_v50, %v1797_v42  ;;  %v1852_v4 = vld [vmem:[%s5065_s5 + $0x1f8] sm:$0xff] }
 0x174   :  { %3420 = vmatprep.subr.bf16.mxu0 %v3419_v62  ;;  %v1815_v45 = vld [vmem:[%s5065_s5 + $0xd0] sm:$0xff]  ;;  %v1816_v62 = vld [vmem:[%s5065_s5 + $0xd8] sm:$0xff] }
 0x175   :  { %3422 = vmatpush3.bf16.msra.mxu0 %v3421_v1  ;;  %v3403_v63 = vpack.c.bf16 %v1816_v62, %v1815_v45  ;;  %v1799_v1 = vld [vmem:[%s5065_s5 + $0x50] sm:$0xff] }
 0x176   :  { %3282 = vmatmul.mubr.msk.f32.gmra.mrb[22].mxu1 %vm847_vm1, %v789_v7  ;;  %3424 = vmatprep.subr.bf16.mxu0 %v3423_v2  ;;  %v3405_v47 = vpack.c.bf16 %v1800_v44, %v1799_v1  ;;  %v1851_v2 = vld [vmem:[%s5065_s5 + $0x1f0] sm:$0xff] }
 0x177   :  { %3292 = vmatprep.mubr.msk.f32.mxu1 %vm847_vm1, %v814_v8  ;;  %v1844_v8 = vld [vmem:[%s5065_s5 + $0x1b8] sm:$0xff]  ;;  %v1835_v5 = vld [vmem:[%s5065_s5 + $0x170] sm:$0xff] }
 0x178   :  { %v3427_v7 = vpack.c.bf16 %v1844_v8, %v1843_v6  ;;  %v1836_v6 = vld [vmem:[%s5065_s5 + $0x178] sm:$0xff]  ;;  %v1817_v8 = vld [vmem:[%s5065_s5 + $0xe0] sm:$0xff] }
 0x179   :  { %3426 = vmatpush3.bf16.msra.mxu0 %v3425_v46  ;;  %v3443_v46 = vpack.c.bf16 %v1852_v4, %v1851_v2 }
 0x17a   :  { %3293 = vmatmul.mubr.msk.f32.vlgmr.msra.gmra.mrb[0].mxu1 %vm847_vm1, %v815_v30  ;;  %v3429_v30 = vpack.c.bf16 %v1828_v58, %v1827_v49  ;;  %3428 = vmatprep.subr.bf16.mxu0 %v3427_v7  ;;  %v1818_v49 = vld [vmem:[%s5065_s5 + $0xe8] sm:$0xff]  ;;  %v3445_v7 = vpack.c.bf16 %v1836_v6, %v1835_v5 }
 0x17b   :  { %3295 = vmatprep.mubr.msk.f32.mxu1 %vm847_vm1, %v816_v9  ;;  %v1845_v9 = vld [vmem:[%s5065_s5 + $0x1c0] sm:$0xff]  ;;  %v3407_v58 = vpack.c.bf16 %v1818_v49, %v1817_v8 }
 0x17c   :  { %v3431_v11 = vpack.c.bf16 %v1846_v48, %v1845_v9  ;;  %v1801_v9 = vld [vmem:[%s5065_s5 + $0x60] sm:$0xff]  ;;  %v1802_v48 = vld [vmem:[%s5065_s5 + $0x68] sm:$0xff] }
 0x17d   :  { %3430 = vmatpush3.bf16.msra.mxu0 %v3429_v30  ;;  %v4553_v30 = vld [vmem:[%s5064_s4] ss:$0 sm:$0xff] }
 0x17e   :  { %3296 = vmatmul.mubr.msk.f32.gmra.mrb[2].mxu1 %vm847_vm1, %v817_v0  ;;  %v1847_v0 = vld [vmem:[%s5065_s5 + $0x1d0] sm:$0xff]  ;;  %3432 = vmatprep.subr.bf16.mxu0 %v3431_v11  ;;  %v3409_v11 = vpack.c.bf16 %v1802_v48, %v1801_v9 }
 0x17f   :  { %3298 = vmatprep.mubr.msk.f32.mxu1 %vm847_vm1, %v818_v12  ;;  %v1829_v12 = vld [vmem:[%s5065_s5 + $0x140] sm:$0xff]  ;;  %v3435_v3 = vpack.c.bf16 %v1848_v13, %v1847_v0  ;;  %v1820_v0 = vld [vmem:[%s5065_s5 + $0xf8] sm:$0xff] }
 0x182   :  { %3299 = vmatmul.mubr.msk.f32.gmra.mrb[4].mxu1 %vm847_vm1, %v819_v28  ;;  %v3433_v28 = vpack.c.bf16 %v1830_v55, %v1829_v12  ;;  %v1819_v55 = vld [vmem:[%s5065_s5 + $0xf0] sm:$0xff] }
 0x183   :  { %3301 = vmatprep.mubr.msk.f32.mxu1 %vm847_vm1, %v820_v15  ;;  %v1831_v15 = vld [vmem:[%s5065_s5 + $0x150] sm:$0xff] }
 0x184   :  { %3434 = vmatpush3.bf16.msra.mxu0 %v3433_v28  ;;  %v3437_v35 = vpack.c.bf16 %v1832_v26, %v1831_v15  ;;  %v3411_v15 = vpack.c.bf16 %v1820_v0, %v1819_v55  ;;  %v1803_v26 = vld [vmem:[%s5065_s5 + $0x70] sm:$0xff]  ;;  %v1804_v28 = vld [vmem:[%s5065_s5 + $0x78] sm:$0xff] }
 0x185   :  { %3436 = vmatprep.subr.bf16.mxu0 %v3435_v3 }
 0x186   :  { %3302 = vmatmul.mubr.msk.f32.gmra.mrb[6].mxu1 %vm847_vm1, %v821_v17  ;;  %v3383_v17 = vpack.c.bf16 %v1806_v10, %v1805_v32  ;;  %v3413_v10 = vpack.c.bf16 %v1804_v28, %v1803_v26 }
 0x187   :  { %3304 = vmatprep.mubr.msk.f32.mxu1 %vm847_vm1, %v822_v16  ;;  %v1789_v16 = vld [vmem:[%s5065_s5] sm:$0xff] }
 0x188   :  { %3384 = vmatprep.subr.bf16.mxu1 %v3383_v17  ;;  %3438 = vmatpush3.bf16.msra.mxu0 %v3437_v35  ;;  %v1869_v17 = vld [vmem:[%s5065_s5 + $0x280] sm:$0xff] }
 0x18a   :  { %3305 = vmatmul.mubr.msk.f32.gmra.mrb[8].mxu1 %vm847_vm1, %v823_v19  ;;  %v1790_v19 = vld [vmem:[%s5065_s5 + $0x8] sm:$0xff] }
 0x18b   :  { %3307 = vmatprep.mubr.msk.f32.mxu1 %vm847_vm1, %v824_v34  ;;  %v1808_v34 = vld [vmem:[%s5065_s5 + $0x98] sm:$0xff]  ;;  %v3385_v31 = vpack.c.bf16 %v1790_v19, %v1789_v16  ;;  %v1870_v19 = vld [vmem:[%s5065_s5 + $0x288] sm:$0xff] }
 0x18d   :  { %3386 = vmatpush3.bf16.msra.mxu1 %v3385_v31  ;;  %v3447_v31 = vpack.c.bf16 %v1870_v19, %v1869_v17 }
 0x18e   :  { %3308 = vmatmul.mubr.msk.f32.gmra.mrb[10].mxu1 %vm847_vm1, %v825_v33  ;;  %v3387_v33 = vpack.c.bf16 %v1808_v34, %v1807_v14 }
 0x18f   :  { %3310 = vmatprep.mubr.msk.f32.mxu1 %vm847_vm1, %v826_v18  ;;  %v1792_v18 = vld [vmem:[%s5065_s5 + $0x18] sm:$0xff] }
 0x190   :  { %3388 = vmatprep.subr.bf16.mxu1 %v3387_v33 }
 0x192   :  { %3311 = vmatmul.mubr.msk.f32.gmra.mrb[12].mxu1 %vm847_vm1, %v827_v23  ;;  %v1810_v23 = vld [vmem:[%s5065_s5 + $0xa8] sm:$0xff] }
 0x193   :  { %3313 = vmatprep.mubr.msk.f32.mxu1 %vm847_vm1, %v828_v36  ;;  %v3389_v36 = vpack.c.bf16 %v1792_v18, %v1791_v20 }
 0x195   :  { %3390 = vmatpush3.bf16.msra.mxu1 %v3389_v36 }
 0x196   :  { %3314 = vmatmul.mubr.msk.f32.gmra.mrb[14].mxu1 %vm847_vm1, %v829_v24  ;;  %v1849_v24 = vld [vmem:[%s5065_s5 + $0x1e0] sm:$0xff] }
 0x197   :  { %3316 = vmatprep.mubr.msk.f32.mxu1 %vm847_vm1, %v830_v25  ;;  %v3391_v25 = vpack.c.bf16 %v1810_v23, %v1809_v21 }
 0x199   :  { %3392 = vmatprep.subr.bf16.mxu1 %v3391_v25 }
 0x19a   :  { %3317 = vmatmul.mubr.msk.f32.gmra.mrb[16].mxu1 %vm847_vm1, %v831_v52  ;;  %v3439_v52 = vpack.c.bf16 %v1850_v37, %v1849_v24 }
 0x19b   :  { %3319 = vmatprep.mubr.msk.f32.mxu1 %vm847_vm1, %v832_v38  ;;  %v1834_v38 = vld [vmem:[%s5065_s5 + $0x168] sm:$0xff]  ;;  %3394 = vmatpush3.bf16.msra.mxu1 %v3393_v41 }
 0x19c   :  { %3440 = vmatprep.subr.bf16.mxu0 %v3439_v52  ;;  %v1901_v52 = vld [vmem:[%s5065_s5 + $0x380] sm:$0xff] }
 0x19e   :  { %3320 = vmatmul.mubr.msk.f32.gmra.mrb[18].mxu1 %vm847_vm1, %v833_v54  ;;  %v1812_v54 = vld [vmem:[%s5065_s5 + $0xb8] sm:$0xff] }
 0x19f   :  { %3322 = vmatprep.mubr.msk.f32.mxu1 %vm847_vm1, %v834_v56  ;;  %v3441_v56 = vpack.c.bf16 %v1834_v38, %v1833_v39  ;;  %v3395_v57 = vpack.c.bf16 %v1812_v54, %v1811_v53  ;;  %v1902_v38 = vld [vmem:[%s5065_s5 + $0x388] sm:$0xff] }
 0x1a0   :  { %v3479_v41 = vpack.c.bf16 %v1902_v38, %v1901_v52  ;;  %v1855_v38 = vld [vmem:[%s5065_s5 + $0x210] sm:$0xff] }
 0x1a1   :  { %3442 = vmatpush3.bf16.msra.mxu0 %v3441_v56  ;;  %3396 = vmatprep.subr.bf16.mxu1 %v3395_v57 }
 0x1a2   :  { %3323 = vmatmul.mubr.msk.f32.gmra.mrb[20].mxu1 %vm847_vm1, %v835_v40  ;;  %v1795_v40 = vld [vmem:[%s5065_s5 + $0x30] sm:$0xff]  ;;  %3444 = vmatprep.subr.bf16.mxu0 %v3443_v46 }
 0x1a3   :  { %3325 = vmatprep.mubr.msk.f32.mxu1 %vm847_vm1, %v836_v59  ;;  %v1813_v59 = vld [vmem:[%s5065_s5 + $0xc0] sm:$0xff]  ;;  %v3397_v27 = vpack.c.bf16 %v1796_v43, %v1795_v40 }
 0x1a5   :  { %3398 = vmatpush3.bf16.msra.mxu1 %v3397_v27  ;;  %3446 = vmatpush3.bf16.msra.mxu0 %v3445_v7 }
 0x1a6   :  { %3326 = vmatmul.mubr.msk.f32.gmra.mrb[22].mxu1 %vm847_vm1, %v837_v60  ;;  %v1814_v60 = vld [vmem:[%s5065_s5 + $0xc8] sm:$0xff]  ;;  %3480 = vmatprep.subr.bf16.mxu0 %v3479_v41 }
 0x1a7   :  { %v3399_v61 = vpack.c.bf16 %v1814_v60, %v1813_v59 }
 0x1a9   :  { %3400 = vmatprep.subr.bf16.mxu1 %v3399_v61 }
 0x1aa   :  { %3402 = vmatpush3.bf16.msra.mxu1 %v3401_v29 }
 0x1ab   :  { %3404 = vmatprep.subr.bf16.mxu1 %v3403_v63 }
 0x1ae   :  { %3406 = vmatpush3.bf16.msra.mxu1 %v3405_v47 }
 0x1af   :  { %3408 = vmatprep.subr.bf16.mxu1 %v3407_v58 }
 0x1b2   :  { %3410 = vmatpush3.bf16.msra.mxu1 %v3409_v11 }
 0x1b3   :  { %3412 = vmatprep.subr.bf16.mxu1 %v3411_v15 }
 0x1b6   :  { %3414 = vmatpush3.bf16.msra.mxu1 %v3413_v10 }
 0x1b7   :  { %3448 = vmatprep.subr.bf16.mxu1 %v3447_v31 }
 0x24d   :  { %v3294_v12 = vpop.f32.mrb[0].mxu1 }
 0x24e   :  { %v1505_v13 = vpop.f32.mrb[1].mxu1  ;;  %v1656_v20 = vadd.f32 %v3294_v12, %v4553_v30 }
 0x24f   :  { %v1655_v32 = vadd.f32 %v4553_v30, %v1505_v13 }
 0x250   :  { %v1680_v22 = vmax.f32 %v1656_v20, 0.0 }
 0x251   :  { %v1679_v16 = vmax.f32 %v1655_v32, 0.0  ;;  %v3297_v3 = vpop.f32.mrb[2].mxu1 }
 0x252   :  { %v1658_v14 = vadd.f32 %v3297_v3, %v4553_v30  ;;  %v1515_v34 = vpop.f32.mrb[3].mxu1 }
 0x253   :  { %1704 = vst.msk [vmem:[#allocation2] sm:$0xff] %vm1703_vm2, %v1679_v16  ;;  %v1657_v33 = vadd.f32 %v4553_v30, %v1515_v34 }
 0x254   :  { %v1682_v18 = vmax.f32 %v1658_v14, 0.0 }
 0x255   :  { %v1681_v21 = vmax.f32 %v1657_v33, 0.0  ;;  %v3300_v23 = vpop.f32.mrb[4].mxu1 }
 0x256   :  { %1713 = vrot.lane.b32.xlu0 %v1682_v18, %s3666_s13  ;;  %v1525_v35 = vpop.f32.mrb[5].mxu1  ;;  %v1660_v53 = vadd.f32 %v3300_v23, %v4553_v30 }
 0x257   :  { %1711 = vst.msk [vmem:[#allocation2 + $0x8] sm:$0xff] %vm1703_vm2, %v1681_v21  ;;  %v1659_v36 = vadd.f32 %v4553_v30, %v1525_v35 }
 0x258   :  { %v1684_v59 = vmax.f32 %v1660_v53, 0.0  ;;  %v1856_v53 = vld [vmem:[%s5065_s5 + $0x218] sm:$0xff] }
 0x259   :  { %v1683_v24 = vmax.f32 %v1659_v36, 0.0  ;;  %v3303_v37 = vpop.f32.mrb[6].mxu1 }
 0x25a   :  { %v1662_v25 = vadd.f32 %v3303_v37, %v4553_v30  ;;  %1706 = vrot.lane.b32.xlu0 %v1680_v22, %s3666_s13  ;;  %v1535_v51 = vpop.f32.mrb[7].mxu1  ;;  %v1853_v22 = vld [vmem:[%s5065_s5 + $0x200] sm:$0xff] }
 0x25b   :  { %1717 = vst.msk [vmem:[#allocation2 + $0x10] sm:$0xff] %vm1703_vm2, %v1683_v24  ;;  %v1661_v39 = vadd.f32 %v4553_v30, %v1535_v51  ;;  %v1872_v51 = vld [vmem:[%s5065_s5 + $0x298] sm:$0xff] }
 0x25c   :  { %v1686_v54 = vmax.f32 %v1662_v25, 0.0  ;;  %v1871_v25 = vld [vmem:[%s5065_s5 + $0x290] sm:$0xff] }
 0x25d   :  { %v1685_v56 = vmax.f32 %v1661_v39, 0.0  ;;  %v3306_v57 = vpop.f32.mrb[8].mxu1  ;;  %v3451_v39 = vpack.c.bf16 %v1872_v51, %v1871_v25 }
 0x25e   :  { %1725 = vrot.lane.b32.xlu1 %v1686_v54, %s3666_s13  ;;  %v1545_v40 = vpop.f32.mrb[9].mxu1  ;;  %v1664_v60 = vadd.f32 %v3306_v57, %v4553_v30  ;;  %v1874_v57 = vld [vmem:[%s5065_s5 + $0x2a8] sm:$0xff] }
 0x25f   :  { %1723 = vst.msk [vmem:[#allocation2 + $0x18] sm:$0xff] %vm1703_vm2, %v1685_v56  ;;  %v1663_v43 = vadd.f32 %v4553_v30, %v1545_v40  ;;  %v1873_v56 = vld [vmem:[%s5065_s5 + $0x2a0] sm:$0xff]  ;;  %v3453_v40 = vpack.c.bf16 %v1856_v53, %v1855_v38 }
 0x260   :  { %v1688_v62 = vmax.f32 %v1664_v60, 0.0  ;;  %v1885_v60 = vld [vmem:[%s5065_s5 + $0x300] sm:$0xff] }
 0x261   :  { %v1687_v27 = vmax.f32 %v1663_v43, 0.0  ;;  %v3309_v61 = vpop.f32.mrb[10].mxu1  ;;  %v1857_v43 = vld [vmem:[%s5065_s5 + $0x220] sm:$0xff] }
 0x262   :  { %v1666_v42 = vadd.f32 %v3309_v61, %v4553_v30  ;;  %1719 = vrot.lane.b32.xlu1 %v1684_v59, %s3666_s13  ;;  %v1555_v50 = vpop.f32.mrb[11].mxu1  ;;  %v1858_v59 = vld [vmem:[%s5065_s5 + $0x228] sm:$0xff]  ;;  %v1893_v38 = vld [vmem:[%s5065_s5 + $0x340] sm:$0xff] }
 0x263   :  { %1729 = vst.msk [vmem:[#allocation2 + $0x20] sm:$0xff] %vm1703_vm2, %v1687_v27  ;;  %v1665_v45 = vadd.f32 %v4553_v30, %v1555_v50  ;;  %v3455_v27 = vpack.c.bf16 %v1874_v57, %v1873_v56  ;;  %v1886_v61 = vld [vmem:[%s5065_s5 + $0x308] sm:$0xff]  ;;  %v1876_v50 = vld [vmem:[%s5065_s5 + $0x2b8] sm:$0xff]  ;;  %v1883_v56 = vld [vmem:[%s5065_s5 + $0x2f0] sm:$0xff] }
 0x264   :  { %v1690_v29 = vmax.f32 %v1666_v42, 0.0  ;;  %v1875_v42 = vld [vmem:[%s5065_s5 + $0x2b0] sm:$0xff]  ;;  %v1884_v57 = vld [vmem:[%s5065_s5 + $0x2f8] sm:$0xff] }
 0x265   :  { %v1689_v63 = vmax.f32 %v1665_v45, 0.0  ;;  %v3312_v1 = vpop.f32.mrb[12].mxu1 }
 0x266   :  { %v1668_v44 = vadd.f32 %v3312_v1, %v4553_v30  ;;  %1731 = vrot.lane.b32.xlu1 %v1688_v62, %s3666_s13  ;;  %1737 = vrot.lane.b32.xlu0 %v1690_v29, %s3666_s13  ;;  %v1565_v47 = vpop.f32.mrb[13].mxu1  ;;  %v1904_v1 = vld [vmem:[%s5065_s5 + $0x398] sm:$0xff] }
 0x267   :  { %1735 = vst.msk [vmem:[#allocation2 + $0x28] sm:$0xff] %vm1703_vm2, %v1689_v63  ;;  %v1667_v2 = vadd.f32 %v4553_v30, %v1565_v47  ;;  %v1903_v63 = vld [vmem:[%s5065_s5 + $0x390] sm:$0xff]  ;;  %v3481_v47 = vpack.c.bf16 %v1886_v61, %v1885_v60  ;;  %v1912_v60 = vld [vmem:[%s5065_s5 + $0x3d8] sm:$0xff] }
 0x268   :  { %v1692_v4 = vmax.f32 %v1668_v44, 0.0  ;;  %v3457_v44 = vpack.c.bf16 %v1858_v59, %v1857_v43  ;;  %v1911_v59 = vld [vmem:[%s5065_s5 + $0x3d0] sm:$0xff] }
 0x269   :  { %v1691_v5 = vmax.f32 %v1667_v2, 0.0  ;;  %v3315_v46 = vpop.f32.mrb[14].mxu1  ;;  %v1859_v2 = vld [vmem:[%s5065_s5 + $0x230] sm:$0xff] }
 0x26a   :  { %v1670_v6 = vadd.f32 %v3315_v46, %v4553_v30  ;;  %1743 = vrot.lane.b32.xlu1 %v1692_v4, %s3666_s13  ;;  %v1575_v8 = vpop.f32.mrb[15].mxu1  ;;  %v1860_v4 = vld [vmem:[%s5065_s5 + $0x238] sm:$0xff]  ;;  %v3459_v46 = vpack.c.bf16 %v1876_v50, %v1875_v42  ;;  %v1867_v42 = vld [vmem:[%s5065_s5 + $0x270] sm:$0xff] }
 0x26b   :  { %1741 = vst.msk [vmem:[#allocation2 + $0x30] sm:$0xff] %vm1703_vm2, %v1691_v5  ;;  %v1669_v49 = vadd.f32 %v4553_v30, %v1575_v8  ;;  %v1887_v5 = vld [vmem:[%s5065_s5 + $0x310] sm:$0xff]  ;;  %v1888_v8 = vld [vmem:[%s5065_s5 + $0x318] sm:$0xff] }
 0x26c   :  { %v1694_v7 = vmax.f32 %v1670_v6, 0.0  ;;  %v3483_v6 = vpack.c.bf16 %v1904_v1, %v1903_v63  ;;  %v1868_v50 = vld [vmem:[%s5065_s5 + $0x278] sm:$0xff]  ;;  %v1913_v1 = vld [vmem:[%s5065_s5 + $0x3e0] sm:$0xff] }
 0x26d   :  { %v1693_v58 = vmax.f32 %v1669_v49, 0.0  ;;  %v3318_v9 = vpop.f32.mrb[16].mxu1  ;;  %v1877_v49 = vld [vmem:[%s5065_s5 + $0x2c0] sm:$0xff]  ;;  %v1896_v63 = vld [vmem:[%s5065_s5 + $0x358] sm:$0xff] }
 0x26e   :  { %v1672_v48 = vadd.f32 %v3318_v9, %v4553_v30  ;;  %1749 = vrot.lane.b32.xlu0 %v1694_v7, %s3666_s13  ;;  %v1585_v11 = vpop.f32.mrb[17].mxu1  ;;  %v1878_v7 = vld [vmem:[%s5065_s5 + $0x2c8] sm:$0xff] }
 0x26f   :  { %1747 = vst.msk [vmem:[#allocation2 + $0x38] sm:$0xff] %vm1703_vm2, %v1693_v58  ;;  %v1671_v12 = vadd.f32 %v4553_v30, %v1585_v11  ;;  %v1906_v11 = vld [vmem:[%s5065_s5 + $0x3a8] sm:$0xff] }
 0x270   :  { %v1696_v55 = vmax.f32 %v1672_v48, 0.0  ;;  %v1905_v48 = vld [vmem:[%s5065_s5 + $0x3a0] sm:$0xff] }
 0x271   :  { %v1695_v0 = vmax.f32 %v1671_v12, 0.0  ;;  %v3321_v13 = vpop.f32.mrb[18].mxu1  ;;  %v3461_v12 = vpack.c.bf16 %v1860_v4, %v1859_v2  ;;  %v1933_v2 = vld [vmem:[%s5065_s5 + $0x480] sm:$0xff]  ;;  %v1934_v4 = vld [vmem:[%s5065_s5 + $0x488] sm:$0xff] }
 0x272   :  { %v1674_v15 = vadd.f32 %v3321_v13, %v4553_v30  ;;  %1755 = vrot.lane.b32.xlu1 %v1696_v55, %s3666_s13  ;;  %v1595_v26 = vpop.f32.mrb[19].mxu1  ;;  %v3485_v55 = vpack.c.bf16 %v1888_v8, %v1887_v5  ;;  %v1862_v13 = vld [vmem:[%s5065_s5 + $0x248] sm:$0xff]  ;;  %v3477_v5 = vpack.c.bf16 %v1868_v50, %v1867_v42 }
 0x273   :  { %1753 = vst.msk [vmem:[#allocation2 + $0x40] sm:$0xff] %vm1703_vm2, %v1695_v0  ;;  %v1673_v28 = vadd.f32 %v4553_v30, %v1595_v26  ;;  %v1861_v0 = vld [vmem:[%s5065_s5 + $0x240] sm:$0xff]  ;;  %v3463_v26 = vpack.c.bf16 %v1878_v7, %v1877_v49  ;;  %v3511_v49 = vpack.c.bf16 %v1934_v4, %v1933_v2  ;;  %v1898_v7 = vld [vmem:[%s5065_s5 + $0x368] sm:$0xff]  ;;  %v1944_v2 = vld [vmem:[%s5065_s5 + $0x4d8] sm:$0xff] }
 0x274   :  { %v1698_v32 = vmax.f32 %v1674_v15, 0.0  ;;  %v1889_v15 = vld [vmem:[%s5065_s5 + $0x320] sm:$0xff]  ;;  %v1971_v4 = vld [vmem:[%s5065_s5 + $0x5b0] sm:$0xff] }
 0x275   :  { %v1697_v10 = vmax.f32 %v1673_v28, 0.0  ;;  %v3324_v16 = vpop.f32.mrb[20].mxu1  ;;  %v3487_v28 = vpack.c.bf16 %v1906_v11, %v1905_v48  ;;  %v1915_v11 = vld [vmem:[%s5065_s5 + $0x3f0] sm:$0xff] }
 0x276   :  { %v1676_v3 = vadd.f32 %v3324_v16, %v4553_v30  ;;  %1761 = vrot.lane.b32.xlu0 %v1698_v32, %s3666_s13  ;;  %v1605_v17 = vpop.f32.mrb[21].mxu1  ;;  %v1890_v32 = vld [vmem:[%s5065_s5 + $0x328] sm:$0xff]  ;;  %v1880_v16 = vld [vmem:[%s5065_s5 + $0x2d8] sm:$0xff] }
 0x277   :  { %1759 = vst.msk [vmem:[#allocation2 + $0x48] sm:$0xff] %vm1703_vm2, %v1697_v10  ;;  %v1675_v19 = vadd.f32 %v4553_v30, %v1605_v17  ;;  %v1879_v10 = vld [vmem:[%s5065_s5 + $0x2d0] sm:$0xff] }
 0x278   :  { %v1700_v14 = vmax.f32 %v1676_v3, 0.0 }
 0x279   :  { %v1699_v34 = vmax.f32 %v1675_v19, 0.0  ;;  %v3327_v31 = vpop.f32.mrb[22].mxu1  ;;  %v1907_v19 = vld [vmem:[%s5065_s5 + $0x3b0] sm:$0xff] }
 0x27a   :  { %v1678_v33 = vadd.f32 %v3327_v31, %v4553_v30  ;;  %1767 = vrot.lane.b32.xlu1 %v1700_v14, %s3666_s13  ;;  %v1615_v20 = vpop.f32.mrb[23].mxu1  ;;  %v1908_v14 = vld [vmem:[%s5065_s5 + $0x3b8] sm:$0xff]  ;;  %v3489_v31 = vpack.c.bf16 %v1890_v32, %v1889_v15  ;;  %v1919_v32 = vld [vmem:[%s5065_s5 + $0x410] sm:$0xff] }
 0x27b   :  { %1765 = vst.msk [vmem:[#allocation2 + $0x50] sm:$0xff] %vm1703_vm2, %v1699_v34  ;;  %v1677_v18 = vadd.f32 %v4553_v30, %v1615_v20  ;;  %v1854_v30 = vld [vmem:[%s5065_s5 + $0x208] sm:$0xff]  ;;  %v3465_v34 = vpack.c.bf16 %v1862_v13, %v1861_v0  ;;  %v1864_v20 = vld [vmem:[%s5065_s5 + $0x258] sm:$0xff] }
 0x27c   :  { %v1702_v21 = vmax.f32 %v1678_v33, 0.0  ;;  %v3449_v52 = vpack.c.bf16 %v1854_v30, %v1853_v22  ;;  %v1863_v33 = vld [vmem:[%s5065_s5 + $0x250] sm:$0xff]  ;;  %v1882_v30 = vld [vmem:[%s5065_s5 + $0x2e8] sm:$0xff]  ;;  %v1936_v0 = vld [vmem:[%s5065_s5 + $0x498] sm:$0xff] }
 0x27d   :  { %v1701_v23 = vmax.f32 %v1677_v18, 0.0  ;;  %v3467_v18 = vpack.c.bf16 %v1880_v16, %v1879_v10  ;;  %v3469_v25 = vpack.c.bf16 %v1864_v20, %v1863_v33  ;;  %v1920_v16 = vld [vmem:[%s5065_s5 + $0x418] sm:$0xff] }
 0x27e   :  { %1773 = vrot.lane.b32.xlu0 %v1702_v21, %s3666_s13  ;;  %v3491_v21 = vpack.c.bf16 %v1908_v14, %v1907_v19 }
 0x27f   :  { %1771 = vst.msk [vmem:[#allocation2 + $0x58] sm:$0xff] %vm1703_vm2, %v1701_v23  ;;  %v1891_v23 = vld [vmem:[%s5065_s5 + $0x330] sm:$0xff] }
 0x2c8   :  { %v1714_v35 = vpop.permute.xlu0 %1713 }
 0x2c9   :  { %1716 = vst.msk [vmem:[#allocation2 + $0x8] sm:$0xff] %vm1709_vm3, %v1714_v35  ;;  %v1892_v35 = vld [vmem:[%s5065_s5 + $0x338] sm:$0xff] }
 0x2ca   :  { %v3493_v51 = vpack.c.bf16 %v1892_v35, %v1891_v23 }
 0x2cc   :  { %v1707_v36 = vpop.permute.xlu0 %1706 }
 0x2cd   :  { %1710 = vst.msk [vmem:[#allocation2] sm:$0xff] %vm1709_vm3, %v1707_v36  ;;  %v1881_v36 = vld [vmem:[%s5065_s5 + $0x2e0] sm:$0xff] }
 0x2ce   :  { %v3471_v53 = vpack.c.bf16 %v1882_v30, %v1881_v36  ;;  %v1922_v36 = vld [vmem:[%s5065_s5 + $0x428] sm:$0xff] }
 0x2cf   :  { %v1950_v30 = vld [vmem:[%s5065_s5 + $0x508] sm:$0xff] }
 0x2d0   :  { %v1726_v24 = vpop.permute.xlu1 %1725  ;;  %v1778_v37 = vld [vmem:[#allocation2 + $0x8] sm:$0xff] }
 0x2d1   :  { %1728 = vst.msk [vmem:[#allocation2 + $0x18] sm:$0xff] %vm1709_vm3, %v1726_v24  ;;  %2052 = vmatprep.mubr.f32.mxu1 %v1778_v37  ;;  %v1909_v24 = vld [vmem:[%s5065_s5 + $0x3c0] sm:$0xff]  ;;  %v1910_v37 = vld [vmem:[%s5065_s5 + $0x3c8] sm:$0xff] }
 0x2d4   :  { %v1720_v54 = vpop.permute.xlu1 %1719  ;;  %v1777_v41 = vld [vmem:[#allocation2] sm:$0xff] }
 0x2d5   :  { %1722 = vst.msk [vmem:[#allocation2 + $0x10] sm:$0xff] %vm1709_vm3, %v1720_v54  ;;  %2053 = vmatmul.mubr.f32.vlgmr.msra.gmra.mrb[24].mxu1 %v1777_v41  ;;  %v3495_v54 = vpack.c.bf16 %v1910_v37, %v1909_v24  ;;  %v1894_v41 = vld [vmem:[%s5065_s5 + $0x348] sm:$0xff]  ;;  %v1939_v24 = vld [vmem:[%s5065_s5 + $0x4b0] sm:$0xff]  ;;  %v1940_v37 = vld [vmem:[%s5065_s5 + $0x4b8] sm:$0xff] }
 0x2d6   :  { %3450 = vmatpush3.bf16.msra.mxu1 %v3449_v52  ;;  %v1865_v52 = vld [vmem:[%s5065_s5 + $0x260] sm:$0xff]  ;;  %v3497_v61 = vpack.c.bf16 %v1894_v41, %v1893_v38  ;;  %v1923_v38 = vld [vmem:[%s5065_s5 + $0x430] sm:$0xff]  ;;  %v3523_v41 = vpack.c.bf16 %v1940_v37, %v1939_v24 }
 0x2d7   :  { %3452 = vmatprep.subr.bf16.mxu1 %v3451_v39  ;;  %v1866_v39 = vld [vmem:[%s5065_s5 + $0x268] sm:$0xff] }
 0x2d8   :  { %v1732_v45 = vpop.permute.xlu1 %1731  ;;  %v1738_v62 = vpop.permute.xlu0 %1737  ;;  %v1780_v29 = vld [vmem:[#allocation2 + $0x18] sm:$0xff] }
 0x2d9   :  { %1734 = vst.msk [vmem:[#allocation2 + $0x20] sm:$0xff] %vm1709_vm3, %v1732_v45  ;;  %1740 = vst.msk [vmem:[#allocation2 + $0x28] sm:$0xff] %vm1709_vm3, %v1738_v62  ;;  %2122 = vmatprep.mubr.f32.mxu0 %v1780_v29  ;;  %v3475_v45 = vpack.c.bf16 %v1884_v57, %v1883_v56  ;;  %v3499_v62 = vpack.c.bf16 %v1912_v60, %v1911_v59  ;;  %v1895_v29 = vld [vmem:[%s5065_s5 + $0x350] sm:$0xff]  ;;  %v1952_v56 = vld [vmem:[%s5065_s5 + $0x518] sm:$0xff] }
 0x2da   :  { %3454 = vmatpush3.bf16.msra.mxu1 %v3453_v40  ;;  %v1941_v57 = vld [vmem:[%s5065_s5 + $0x4c0] sm:$0xff] }
 0x2db   :  { %3456 = vmatprep.subr.bf16.mxu1 %v3455_v27  ;;  %v3473_v27 = vpack.c.bf16 %v1866_v39, %v1865_v52  ;;  %v1969_v60 = vld [vmem:[%s5065_s5 + $0x5a0] sm:$0xff] }
 0x2dc   :  { %v1744_v58 = vpop.permute.xlu1 %1743  ;;  %v1779_v9 = vld [vmem:[#allocation2 + $0x10] sm:$0xff] }
 0x2dd   :  { %1746 = vst.msk [vmem:[#allocation2 + $0x30] sm:$0xff] %vm1709_vm3, %v1744_v58  ;;  %2123 = vmatmul.mubr.f32.vlgmr.msra.gmra.mrb[72].mxu0 %v1779_v9  ;;  %v1917_v58 = vld [vmem:[%s5065_s5 + $0x400] sm:$0xff]  ;;  %v1918_v9 = vld [vmem:[%s5065_s5 + $0x408] sm:$0xff] }
 0x2de   :  { %3458 = vmatpush3.bf16.msra.mxu1 %v3457_v44  ;;  %3482 = vmatpush3.bf16.msra.mxu0 %v3481_v47  ;;  %v1914_v47 = vld [vmem:[%s5065_s5 + $0x3e8] sm:$0xff]  ;;  %v3513_v15 = vpack.c.bf16 %v1918_v9, %v1917_v58  ;;  %v1955_v9 = vld [vmem:[%s5065_s5 + $0x530] sm:$0xff] }
 0x2df   :  { %3460 = vmatprep.subr.bf16.mxu1 %v3459_v46  ;;  %3484 = vmatprep.subr.bf16.mxu0 %v3483_v6  ;;  %v3501_v46 = vpack.c.bf16 %v1896_v63, %v1895_v29  ;;  %v1897_v6 = vld [vmem:[%s5065_s5 + $0x360] sm:$0xff]  ;;  %v3503_v8 = vpack.c.bf16 %v1914_v47, %v1913_v1  ;;  %v1943_v47 = vld [vmem:[%s5065_s5 + $0x4d0] sm:$0xff] }
 0x2e0   :  { %v1750_v3 = vpop.permute.xlu0 %1749  ;;  %v1782_v17 = vld [vmem:[#allocation2 + $0x28] sm:$0xff]  ;;  %v3505_v13 = vpack.c.bf16 %v1898_v7, %v1897_v6  ;;  %v1781_v19 = vld [vmem:[#allocation2 + $0x20] sm:$0xff]  ;;  %v3531_v7 = vpack.c.bf16 %v1944_v2, %v1943_v47  ;;  %v3669_v2 = vmov 0.0  }
 0x2e1   :  { %1752 = vst.msk [vmem:[#allocation2 + $0x38] sm:$0xff] %vm1709_vm3, %v1750_v3  ;;  %2192 = vmatprep.mubr.f32.mxu1 %v1782_v17  ;;  %v1937_v3 = vld [vmem:[%s5065_s5 + $0x4a0] sm:$0xff]  ;;  %v1938_v17 = vld [vmem:[%s5065_s5 + $0x4a8] sm:$0xff] }
 0x2e2   :  { %3462 = vmatpush3.bf16.msra.mxu1 %v3461_v12  ;;  %3486 = vmatpush3.bf16.msra.mxu0 %v3485_v55  ;;  %v1916_v12 = vld [vmem:[%s5065_s5 + $0x3f8] sm:$0xff]  ;;  %v1935_v55 = vld [vmem:[%s5065_s5 + $0x490] sm:$0xff]  ;;  %v3519_v23 = vpack.c.bf16 %v1938_v17, %v1937_v3  ;;  %v1953_v1 = vld [vmem:[%s5065_s5 + $0x520] sm:$0xff] }
 0x2e3   :  { %3464 = vmatprep.subr.bf16.mxu1 %v3463_v26  ;;  %3488 = vmatprep.subr.bf16.mxu0 %v3487_v28  ;;  %v1899_v26 = vld [vmem:[%s5065_s5 + $0x370] sm:$0xff]  ;;  %v1900_v28 = vld [vmem:[%s5065_s5 + $0x378] sm:$0xff]  ;;  %v3507_v10 = vpack.c.bf16 %v1916_v12, %v1915_v11  ;;  %v3515_v14 = vpack.c.bf16 %v1936_v0, %v1935_v55  ;;  %v1945_v11 = vld [vmem:[%s5065_s5 + $0x4e0] sm:$0xff] }
 0x2e4   :  { %v1756_v22 = vpop.permute.xlu1 %1755  ;;  %v3509_v20 = vpack.c.bf16 %v1900_v28, %v1899_v26  ;;  %v1946_v12 = vld [vmem:[%s5065_s5 + $0x4e8] sm:$0xff]  ;;  %v1973_v55 = vld [vmem:[%s5065_s5 + $0x5c0] sm:$0xff]  ;;  %v1947_v17 = vld [vmem:[%s5065_s5 + $0x4f0] sm:$0xff] }
 0x2e5   :  { %1758 = vst.msk [vmem:[#allocation2 + $0x40] sm:$0xff] %vm1709_vm3, %v1756_v22  ;;  %v1949_v22 = vld [vmem:[%s5065_s5 + $0x500] sm:$0xff]  ;;  %v1974_v0 = vld [vmem:[%s5065_s5 + $0x5c8] sm:$0xff] }
 0x2e6   :  { %3466 = vmatpush3.bf16.msra.mxu1 %v3465_v34  ;;  %3490 = vmatpush3.bf16.msra.mxu0 %v3489_v31  ;;  %v1965_v34 = vld [vmem:[%s5065_s5 + $0x580] sm:$0xff]  ;;  %v1966_v31 = vld [vmem:[%s5065_s5 + $0x588] sm:$0xff]  ;;  %v3545_v39 = vpack.c.bf16 %v1950_v30, %v1949_v22 }
 0x2e7   :  { %3468 = vmatprep.subr.bf16.mxu1 %v3467_v18  ;;  %3492 = vmatprep.subr.bf16.mxu0 %v3491_v21  ;;  %v3517_v18 = vpack.c.bf16 %v1920_v16, %v1919_v32  ;;  %v1921_v21 = vld [vmem:[%s5065_s5 + $0x420] sm:$0xff]  ;;  %v3543_v35 = vpack.c.bf16 %v1966_v31, %v1965_v34  ;;  %v1930_v28 = vld [vmem:[%s5065_s5 + $0x468] sm:$0xff]  ;;  %v3535_v32 = vpack.c.bf16 %v1946_v12, %v1945_v11  ;;  %v1976_v34 = vld [vmem:[%s5065_s5 + $0x5d8] sm:$0xff] }
 0x2e8   :  { %v1762_v40 = vpop.permute.xlu0 %1761  ;;  %v1784_v43 = vld [vmem:[#allocation2 + $0x38] sm:$0xff]  ;;  %v3521_v52 = vpack.c.bf16 %v1922_v36, %v1921_v21  ;;  %v1929_v26 = vld [vmem:[%s5065_s5 + $0x460] sm:$0xff]  ;;  %v1958_v3 = vld [vmem:[%s5065_s5 + $0x548] sm:$0xff] }
 0x2e9   :  { %1764 = vst.msk [vmem:[#allocation2 + $0x48] sm:$0xff] %vm1709_vm3, %v1762_v40  ;;  %2262 = vmatprep.mubr.f32.mxu0 %v1784_v43  ;;  %v1942_v40 = vld [vmem:[%s5065_s5 + $0x4c8] sm:$0xff]  ;;  %v1783_v43 = vld [vmem:[#allocation2 + $0x30] sm:$0xff]  ;;  %v1957_v16 = vld [vmem:[%s5065_s5 + $0x540] sm:$0xff]  ;;  %v3537_v31 = vpack.c.bf16 %v1930_v28, %v1929_v26 }
 0x2ea   :  { %3470 = vmatpush3.bf16.msra.mxu1 %v3469_v25  ;;  %3494 = vmatpush3.bf16.msra.mxu0 %v3493_v51  ;;  %v1967_v25 = vld [vmem:[%s5065_s5 + $0x590] sm:$0xff]  ;;  %v1968_v51 = vld [vmem:[%s5065_s5 + $0x598] sm:$0xff]  ;;  %v3527_v29 = vpack.c.bf16 %v1942_v40, %v1941_v57  ;;  %v1977_v22 = vld [vmem:[%s5065_s5 + $0x5e0] sm:$0xff] }
 0x2eb   :  { %3472 = vmatprep.subr.bf16.mxu1 %v3471_v53  ;;  %3496 = vmatprep.subr.bf16.mxu0 %v3495_v54  ;;  %v1924_v53 = vld [vmem:[%s5065_s5 + $0x438] sm:$0xff]  ;;  %v1951_v54 = vld [vmem:[%s5065_s5 + $0x510] sm:$0xff]  ;;  %v3547_v59 = vpack.c.bf16 %v1968_v51, %v1967_v25  ;;  %v1978_v30 = vld [vmem:[%s5065_s5 + $0x5e8] sm:$0xff] }
 0x2ec   :  { %v1768_v44 = vpop.permute.xlu1 %1767  ;;  %v3525_v42 = vpack.c.bf16 %v1924_v53, %v1923_v38  ;;  %v3549_v50 = vpack.c.bf16 %v1952_v56, %v1951_v54  ;;  %v1960_v36 = vld [vmem:[%s5065_s5 + $0x558] sm:$0xff]  ;;  %v3567_v25 = vpack.c.bf16 %v1978_v30, %v1977_v22  ;;  %v1961_v51 = vld [vmem:[%s5065_s5 + $0x560] sm:$0xff] }
 0x2ed   :  { %1770 = vst.msk [vmem:[#allocation2 + $0x50] sm:$0xff] %vm1709_vm3, %v1768_v44  ;;  %v1954_v44 = vld [vmem:[%s5065_s5 + $0x528] sm:$0xff]  ;;  %v1980_v38 = vld [vmem:[%s5065_s5 + $0x5f8] sm:$0xff]  ;;  %v1785_v57 = vld [vmem:[#allocation2 + $0x40] sm:$0xff] }
 0x2ee   :  { %3474 = vmatpush3.bf16.msra.mxu1 %v3473_v27  ;;  %3498 = vmatpush3.bf16.msra.mxu0 %v3497_v61  ;;  %v1970_v27 = vld [vmem:[%s5065_s5 + $0x5a8] sm:$0xff]  ;;  %v3553_v6 = vpack.c.bf16 %v1954_v44, %v1953_v1  ;;  %v1964_v56 = vld [vmem:[%s5065_s5 + $0x578] sm:$0xff]  ;;  %v2415_v1 = vld [vmem:[%s5067_s7 + $0x30] sm:$0xff] }
 0x2ef   :  { %3476 = vmatprep.subr.bf16.mxu1 %v3475_v45  ;;  %3500 = vmatprep.subr.bf16.mxu0 %v3499_v62  ;;  %v1925_v45 = vld [vmem:[%s5065_s5 + $0x440] sm:$0xff]  ;;  %v1926_v62 = vld [vmem:[%s5065_s5 + $0x448] sm:$0xff]  ;;  %v3551_v63 = vpack.c.bf16 %v1970_v27, %v1969_v60  ;;  %v2416_v44 = vld [vmem:[%s5067_s7 + $0x38] sm:$0xff] }
 0x2f0   :  { %v1774_v48 = vpop.permute.xlu0 %1773  ;;  %v1786_v33 = vld [vmem:[#allocation2 + $0x48] sm:$0xff]  ;;  %v3585_v47 = vpack.c.bf16 %v2416_v44, %v2415_v1 }
 0x2f1   :  { %1776 = vst.msk [vmem:[#allocation2 + $0x58] sm:$0xff] %vm1709_vm3, %v1774_v48  ;;  %v1956_v48 = vld [vmem:[%s5065_s5 + $0x538] sm:$0xff]  ;;  %v2410_v60 = vld [vmem:[%s5067_s7 + $0x8] sm:$0xff] }
 0x2f2   :  { %3478 = vmatpush3.bf16.msra.mxu1 %v3477_v5  ;;  %3502 = vmatpush3.bf16.msra.mxu0 %v3501_v46  ;;  %v1972_v5 = vld [vmem:[%s5065_s5 + $0x5b8] sm:$0xff]  ;;  %v3529_v46 = vpack.c.bf16 %v1926_v62, %v1925_v45  ;;  %v2413_v62 = vld [vmem:[%s5067_s7 + $0x20] sm:$0xff] }
 0x2f3   :  { %3504 = vmatprep.subr.bf16.mxu0 %v3503_v8  ;;  %3512 = vmatprep.subr.bf16.mxu1 %v3511_v49  ;;  %v1927_v8 = vld [vmem:[%s5065_s5 + $0x450] sm:$0xff]  ;;  %v1928_v49 = vld [vmem:[%s5065_s5 + $0x458] sm:$0xff]  ;;  %v3555_v58 = vpack.c.bf16 %v1972_v5, %v1971_v4 }
 0x2f5   :  { %2193 = vmatmul.mubr.f32.vlgmr.msra.gmra.mrb[26].mxu1 %v1781_v19  ;;  %v1948_v19 = vld [vmem:[%s5065_s5 + $0x4f8] sm:$0xff] }
 0x2f6   :  { %3506 = vmatpush3.bf16.msra.mxu0 %v3505_v13  ;;  %3514 = vmatpush3.bf16.msra.mxu1 %v3513_v15  ;;  %v3533_v13 = vpack.c.bf16 %v1928_v49, %v1927_v8  ;;  %v3557_v15 = vpack.c.bf16 %v1956_v48, %v1955_v9 }
 0x2f7   :  { %2332 = vmatprep.mubr.f32.mxu1 %v1786_v33  ;;  %3508 = vmatprep.subr.bf16.mxu0 %v3507_v10  ;;  %v3559_v10 = vpack.c.bf16 %v1974_v0, %v1973_v55  ;;  %v3561_v33 = vpack.c.bf16 %v1958_v3, %v1957_v16 }
 0x2f8   :  { %3516 = vmatprep.subr.bf16.mxu1 %v3515_v14  ;;  %v1788_v61 = vld [vmem:[#allocation2 + $0x58] sm:$0xff]  ;;  %v1975_v14 = vld [vmem:[%s5065_s5 + $0x5d0] sm:$0xff] }
 0x2f9   :  { %v3563_v21 = vpack.c.bf16 %v1976_v34, %v1975_v14 }
 0x2fa   :  { %3510 = vmatpush3.bf16.msra.mxu0 %v3509_v20  ;;  %3518 = vmatpush3.bf16.msra.mxu1 %v3517_v18  ;;  %v1931_v20 = vld [vmem:[%s5065_s5 + $0x470] sm:$0xff]  ;;  %v3539_v18 = vpack.c.bf16 %v1948_v19, %v1947_v17 }
 0x2fb   :  { %3520 = vmatprep.subr.bf16.mxu1 %v3519_v23  ;;  %3544 = vmatprep.subr.bf16.mxu0 %v3543_v35  ;;  %v1932_v23 = vld [vmem:[%s5065_s5 + $0x478] sm:$0xff]  ;;  %v1959_v35 = vld [vmem:[%s5065_s5 + $0x550] sm:$0xff] }
 0x2fc   :  { %v3541_v24 = vpack.c.bf16 %v1932_v23, %v1931_v20  ;;  %v3565_v37 = vpack.c.bf16 %v1960_v36, %v1959_v35  ;;  %v2694_v35 = vld [vmem:[%s5070_s10] ss:$0 sm:$0xff] }
 0x2fd   :  { %2263 = vmatmul.mubr.f32.vlgmr.msra.gmra.mrb[74].mxu0 %v1783_v43  ;;  %v1787_v43 = vld [vmem:[#allocation2 + $0x50] sm:$0xff] }
 0x2fe   :  { %3522 = vmatpush3.bf16.msra.mxu1 %v3521_v52  ;;  %3546 = vmatpush3.bf16.msra.mxu0 %v3545_v39  ;;  %v1962_v52 = vld [vmem:[%s5065_s5 + $0x568] sm:$0xff]  ;;  %v1979_v39 = vld [vmem:[%s5065_s5 + $0x5f0] sm:$0xff] }
 0x2ff   :  { %2402 = vmatprep.mubr.f32.mxu0 %v1788_v61  ;;  %3524 = vmatprep.subr.bf16.mxu1 %v3523_v41  ;;  %v3569_v53 = vpack.c.bf16 %v1962_v52, %v1961_v51  ;;  %v3571_v54 = vpack.c.bf16 %v1980_v38, %v1979_v39  ;;  %v1963_v41 = vld [vmem:[%s5065_s5 + $0x570] sm:$0xff]  ;;  %v3667_v61 = vmov 0.0|0.0  }
 0x300   :  { %3548 = vmatprep.subr.bf16.mxu0 %v3547_v59  ;;  %v3573_v40 = vpack.c.bf16 %v1964_v56, %v1963_v41  ;;  %v2409_v59 = vld [vmem:[%s5067_s7] sm:$0xff] }
 0x301   :  { %v3576_v27 = vpack.c.bf16 %v2410_v60, %v2409_v59 }
 0x302   :  { %3526 = vmatpush3.bf16.msra.mxu1 %v3525_v42  ;;  %3550 = vmatpush3.bf16.msra.mxu0 %v3549_v50  ;;  %v2411_v42 = vld [vmem:[%s5067_s7 + $0x10] sm:$0xff]  ;;  %v2412_v50 = vld [vmem:[%s5067_s7 + $0x18] sm:$0xff] }
 0x303   :  { %3528 = vmatprep.subr.bf16.mxu1 %v3527_v29  ;;  %3552 = vmatprep.subr.bf16.mxu0 %v3551_v63  ;;  %v3579_v45 = vpack.c.bf16 %v2412_v50, %v2411_v42  ;;  %v2414_v29 = vld [vmem:[%s5067_s7 + $0x28] sm:$0xff] }
 0x304   :  { %v3582_v63 = vpack.c.bf16 %v2414_v29, %v2413_v62 }
 0x306   :  { %3530 = vmatpush3.bf16.msra.mxu1 %v3529_v46  ;;  %3554 = vmatpush3.bf16.msra.mxu0 %v3553_v6  ;;  %v2690_v6 = vld [vmem:[%s5066_s6] ss:$0 sm:$0xff] }
 0x307   :  { %3532 = vmatprep.subr.bf16.mxu1 %v3531_v7  ;;  %3556 = vmatprep.subr.bf16.mxu0 %v3555_v58 }
 0x30a   :  { %3534 = vmatpush3.bf16.msra.mxu1 %v3533_v13  ;;  %3558 = vmatpush3.bf16.msra.mxu0 %v3557_v15 }
 0x30b   :  { %3536 = vmatprep.subr.bf16.mxu1 %v3535_v32  ;;  %3560 = vmatprep.subr.bf16.mxu0 %v3559_v10 }
 0x30e   :  { %3538 = vmatpush3.bf16.msra.mxu1 %v3537_v31  ;;  %3562 = vmatpush3.bf16.msra.mxu0 %v3561_v33  ;;  %v2691_v31 = vld [vmem:[%s5068_s8] ss:$0 sm:$0xff]  ;;  %s3670_s8 = smov [#allocation3]  }
 0x30f   :  { %3540 = vmatprep.subr.bf16.mxu1 %v3539_v18  ;;  %3564 = vmatprep.subr.bf16.mxu0 %v3563_v21  ;;  %v2693_v21 = vld [vmem:[%s5069_s9] ss:$0 sm:$0xff]  ;;  %s2528_s21 = sshll.u32 %s3670_s8, 4  ;;  %s2529_s21 = int_to_ptr.vmem [resolvable:$true] %s2528_s21 }
 0x310   :  { %s3642_s22 = scalar_lea.vmem %s2529_s21, 128  ;;  %p3647_p1 = scmp.lt.s32.totalorder %s2529_s21, %s2529_s21 }
 0x311   :  { %p3643_p0 = scmp.ne.s32.totalorder %s2529_s21, %s3642_s22  ;;  %p3648_p2 = scmp.lt.s32.totalorder %s3642_s22, %s3642_s22 }
 0x312   :  { %3542 = vmatpush3.bf16.msra.mxu1 %v3541_v24  ;;  %3566 = vmatpush3.bf16.msra.mxu0 %v3565_v37 }
 0x313   :  { %3568 = vmatprep.subr.bf16.mxu0 %v3567_v25  ;;  %3575 = vmatprep.subr.bf16.mxu1 %v3667_v61  ;;  %p3649_p3 = por %p3648_p2, %p3647_p1 }
 0x315   :  { %2333 = vmatmul.mubr.f32.vlgmr.msra.gmra.mrb[28].mxu1 %v1785_v57  ;;  %p3650_p4 = pnand %p3649_p3, %p3643_p0 }
 0x316   :  { %3570 = vmatpush3.bf16.msra.mxu0 %v3569_v53  ;;  %3577 = vmatpush3.bf16.msra.mxu1 %v3576_v27 }
 0x317   :  { %3572 = vmatprep.subr.bf16.mxu0 %v3571_v54  ;;  %3578 = vmatprep.subr.bf16.mxu1 %v3667_v61 }
 0x318   :  { %3344 = vmatprep.mubr.msk.f32.mxu1 %vm3668_vm4, %v3669_v2 }
 0x31a   :  { %3574 = vmatpush3.bf16.msra.mxu0 %v3573_v40  ;;  %3580 = vmatpush3.bf16.msra.mxu1 %v3579_v45 }
 0x31b   :  { %3581 = vmatprep.subr.bf16.mxu1 %v3667_v61 }
 0x31d   :  { %2403 = vmatmul.mubr.f32.vlgmr.msra.gmra.mrb[76].mxu0 %v1787_v43 }
 0x31e   :  { %3583 = vmatpush3.bf16.msra.mxu1 %v3582_v63 }
 0x31f   :  { %3584 = vmatprep.subr.bf16.mxu1 %v3667_v61 }
 0x322   :  { %3586 = vmatpush3.bf16.msra.mxu1 %v3585_v47 }
 0x3a8   :  { %v2889_v4 = vpop.f32.mrb[24].mxu1 }
 0x3a9   :  { %v2890_v5 = vpop.f32.mrb[25].mxu1 }
 0x3aa   :  { %v2891_v46 = vadd.f32 %v2890_v5, %v2889_v4 }
 0x3ac   :  { %v2055_v7 = vadd.f32 %v2891_v46, %v2690_v6 }
 0x3b0   :  { %v2924_v8 = vpop.f32.mrb[72].mxu0 }
 0x3b1   :  { %v2925_v49 = vpop.f32.mrb[73].mxu0 }
 0x3b2   :  { %v2926_v58 = vadd.f32 %v2925_v49, %v2924_v8 }
 0x3b4   :  { %v2125_v9 = vadd.f32 %v2926_v58, %v2055_v7 }
 0x3c8   :  { %v2959_v48 = vpop.f32.mrb[26].mxu1 }
 0x3c9   :  { %v2960_v11 = vpop.f32.mrb[27].mxu1 }
 0x3ca   :  { %v2961_v12 = vadd.f32 %v2960_v11, %v2959_v48 }
 0x3cc   :  { %v2195_v55 = vadd.f32 %v2961_v12, %v2125_v9 }
 0x3d0   :  { %v2994_v0 = vpop.f32.mrb[74].mxu0 }
 0x3d1   :  { %v2995_v13 = vpop.f32.mrb[75].mxu0 }
 0x3d2   :  { %v2996_v15 = vadd.f32 %v2995_v13, %v2994_v0 }
 0x3d4   :  { %v2265_v26 = vadd.f32 %v2996_v15, %v2195_v55 }
 0x3e8   :  { %v3029_v28 = vpop.f32.mrb[28].mxu1 }
 0x3e9   :  { %v3030_v32 = vpop.f32.mrb[29].mxu1 }
 0x3ea   :  { %v3031_v10 = vadd.f32 %v3030_v32, %v3029_v28 }
 0x3ec   :  { %v2335_v16 = vadd.f32 %v3031_v10, %v2265_v26 }
 0x3f0   :  { %v3064_v3 = vpop.f32.mrb[76].mxu0 }
 0x3f1   :  { %v3065_v17 = vpop.f32.mrb[77].mxu0 }
 0x3f2   :  { %v3066_v19 = vadd.f32 %v3065_v17, %v3064_v3 }
 0x3f4   :  { %v2405_v14 = vadd.f32 %v3066_v19, %v2335_v16 }
 0x3f6   :  { %v2408_v34 = vmax.f32 %v2405_v14, 0.0 }
 0x3f8   :  { %3345 = vmatmul.mubr.msk.f32.vlgmr.msra.gmra.mrb[30].mxu1 %vm1703_vm2, %v2408_v34 }
 0x4cb   :  { %v2493_v33 = vpop.f32.mrb[30].mxu1 }
 0x4cc   :  { %v2494_v20 = vadd.f32 %v2691_v31, %v2493_v33  ;;  %v3346_v18 = vpop.f32.mrb[31].mxu1 }
 0x4ce   :  { %3640 = vtanh.f32 %v2494_v20 }
 0x4d8   :  { %v3641_v23 = vpop.eup %3640 }
 0x4d9   :  { %v2505_v36 = vmul.f32 %v3641_v23, %v2693_v21 }
 0x4db   :  { %v2513_v22 = vmul.f32 %v2694_v35, %v2505_v36  ;;  %2519 = vst.msk [vmem:[#allocation3] sm:$0xff] %vm2514_vm5, %v2505_v36 }
 0x4dd   :  { %v2515_v30 = vsel %vm2514_vm5, %v2513_v22, 0.0 }
 0x4de   :  { %2516 = vadd.xlane.f32.xlu0 %v2515_v30 }
 0x56b   :  { %v2517_v24 = vpop.xlane.xlu0 %2516 }
 0x56c   :  { %v2518_v37 = vadd.f32 %v2517_v24, %v2494_v20 }
 0x56e   :  { %2521 = vst.msk [vmem:[#allocation3] sm:$0xff] %vm2520_vm6, %v2518_v37 }
 0x56f   :  { %3653 = shalt.err (!%p3650_p4)
}
 0x570   :  { %s3654_s23 = scalar_lea.hbm %s5071_s11, 128 }
 0x571   :  { %p3655_p5 = scmp.ne.s32.totalorder %s5071_s11, %s3654_s23  ;;  %p3658_p6 = scmp.lt.u32.totalorder %s3654_s23, %s5071_s11 }
 0x573   :  { %p3660_p7 = pnand %p3658_p6, %p3655_p5 }
 0x575   :  { %3663 = shalt.err (!%p3660_p7)
}
 0x576   :  { %2531 = dma.vmem_to_hbm [thread:$0]  %s2529_s21, 128, %s5071_s11, [#allocation4]  }
 0x577   :  { %3664 = dma.done.wait [#allocation4], 128  }
 0x578   :  { %3665 = vsyncadd [#allocation4], 4294967168 }
 0x579   :  { %2535 = vsyncpa [#allocation4], 1 }

</bundles_post_ra>
